<compile_context>
chip_gen: v6e
topology: v6e:2x2x1
jax: 0.10.0
libtpu: 0.0.40
codegen_flags: <defaults>
</compile_context>

<pallas_src>
import math

import jax
import jax.numpy as jnp
from jax.experimental import pallas as pl
from jax.experimental.pallas import tpu as pltpu

_VMEM_LIMIT = 64 * 1024 * 1024


# ----------------------- Fused 3-layer GRU stack kernel -----------------------

def gru3_kernel(x_ref,
                w0i_hbm, w0h_hbm, w1i_hbm, w1h_hbm, w2i_hbm, w2h_hbm,
                b0i_ref, b0h_ref, b1i_ref, b1h_ref, b2i_ref, b2h_ref,
                out_ref,
                h0, h1, h2,
                w0i, w0h, w1i, w1h, w2i, w2h,
                sem):
    c = pl.program_id(0)

    @pl.when(c == 0)
    def _():
        # Zero initial hidden states and copy all gate matrices HBM -> VMEM exactly once.
        h0[...] = jnp.zeros_like(h0)
        h1[...] = jnp.zeros_like(h1)
        h2[...] = jnp.zeros_like(h2)
        copies = [
            pltpu.make_async_copy(w0i_hbm, w0i, sem.at[0]),
            pltpu.make_async_copy(w0h_hbm, w0h, sem.at[1]),
            pltpu.make_async_copy(w1i_hbm, w1i, sem.at[2]),
            pltpu.make_async_copy(w1h_hbm, w1h, sem.at[3]),
            pltpu.make_async_copy(w2i_hbm, w2i, sem.at[4]),
            pltpu.make_async_copy(w2h_hbm, w2h, sem.at[5]),
        ]
        for cp in copies:
            cp.start()
        for cp in copies:
            cp.wait()

    TB = x_ref.shape[0]                 # tc * B rows (seq-major flattened chunk)
    B = h0.shape[0]
    H = h0.shape[-1]
    tc = TB // B

    def run_layer(x2d, h_ref, wi, wh, bi, bh):
        # Hoisted input projection over the whole chunk: [tc*B, F] @ [F, 3H] (bf16 -> f32 acc).
        gx = jnp.dot(x2d, wi[...], preferred_element_type=jnp.float32) + bi[...]
        wh_v = wh[...]
        bh_v = bh[...]
        h = h_ref[...]                  # [B, H] f32 carried hidden state
        outs = []
        for t in range(tc):             # static (fully unrolled) sequential time loop
            gx_t = gx[t * B:(t + 1) * B, :]
            gh = jnp.dot(h.astype(jnp.bfloat16), wh_v,
                         preferred_element_type=jnp.float32) + bh_v
            # gate order along last axis: (r, z, n); nonlinearities in f32.
            r = jax.nn.sigmoid(gx_t[:, 0:H] + gh[:, 0:H])
            z = jax.nn.sigmoid(gx_t[:, H:2 * H] + gh[:, H:2 * H])
            n = jnp.tanh(gx_t[:, 2 * H:3 * H] + r * gh[:, 2 * H:3 * H])
            h = n + z * (h - n)         # == (1-z)*n + z*h  (PyTorch GRUCell update)
            outs.append(h)
        h_ref[...] = h
        return jnp.concatenate(outs, axis=0).astype(jnp.bfloat16)   # [tc*B, H]

    a0 = run_layer(x_ref[...], h0, w0i, w0h, b0i_ref, b0h_ref)
    a1 = run_layer(a0, h1, w1i, w1h, b1i_ref, b1h_ref)
    a2 = run_layer(a1, h2, w2i, w2h, b2i_ref, b2h_ref)
    out_ref[...] = a2


def run_gru_stack(x_2d, gru_layers, batch, hidden_size, time_chunk):
    """x_2d: [S*B, E] bf16 (seq-major flattened). Returns ([S_pad*B, H] bf16, S_pad)."""
    SB, E = x_2d.shape
    B = batch
    S = SB // B
    H = hidden_size

    # Chunk of timesteps per grid step; keep tc*B a multiple of 8 (sublane alignment) and
    # pad S up to a multiple of tc (padded tail timesteps are dropped by the caller).
    step = 8 // math.gcd(B, 8)
    tc = max(step, (min(time_chunk, S) // step) * step)
    S_pad = ((S + tc - 1) // tc) * tc
    if S_pad != S:
        x_2d = jnp.pad(x_2d, ((0, (S_pad - S) * B), (0, 0)))
    n_chunks = S_pad // tc

    weights = [gru_layers[0]["wih_t"], gru_layers[0]["whh_t"],
               gru_layers[1]["wih_t"], gru_layers[1]["whh_t"],
               gru_layers[2]["wih_t"], gru_layers[2]["whh_t"]]
    biases = [gru_layers[0]["bih"], gru_layers[0]["bhh"],
              gru_layers[1]["bih"], gru_layers[1]["bhh"],
              gru_layers[2]["bih"], gru_layers[2]["bhh"]]

    in_specs = [pl.BlockSpec((tc * B, E), lambda c: (c, 0))]
    in_specs += [pl.BlockSpec(memory_space=pl.ANY)] * 6          # raw HBM weight refs
    in_specs += [pl.BlockSpec((1, 3 * H), lambda c: (0, 0))] * 6  # tiny biases, DMA'd once

    scratch = ([pltpu.VMEM((B, H), jnp.float32)] * 3 +
               [pltpu.VMEM(w.shape, jnp.bfloat16) for w in weights] +
               [pltpu.SemaphoreType.DMA((6,))])

    out = pl.pallas_call(
        gru3_kernel,
        out_shape=jax.ShapeDtypeStruct((S_pad * B, H), jnp.bfloat16),
        grid_spec=pltpu.PrefetchScalarGridSpec(
            num_scalar_prefetch=0,
            grid=(n_chunks,),
            in_specs=in_specs,
            out_specs=pl.BlockSpec((tc * B, H), lambda c: (c, 0)),
            scratch_shapes=scratch,
        ),
        compiler_params=pltpu.CompilerParams(
            dimension_semantics=("arbitrary",),
            vmem_limit_bytes=_VMEM_LIMIT),
    )(x_2d, *weights, *biases)
    return out, S_pad


# --------- Output projection + cross-entropy (tiled, online softmax) ----------

def ce_kernel(h_ref, w_ref, b_ref, tgt_ref, loss_ref, m_sc, l_sc, p_sc):
    j = pl.program_id(1)                            # vocab-tile index (reduction axis)

    @pl.when(j == 0)
    def _():
        m_sc[...] = jnp.full_like(m_sc, -1e30)
        l_sc[...] = jnp.zeros_like(l_sc)
        p_sc[...] = jnp.zeros_like(p_sc)

    # [tn, tv] logits for this vocab tile, bf16 MXU with f32 accumulation + f32 bias.
    logits = jnp.dot(h_ref[...], w_ref[...],
                     preferred_element_type=jnp.float32) + b_ref[...]

    tv = logits.shape[1]
    vocab_ids = j * tv + jax.lax.broadcasted_iota(jnp.int32, logits.shape, 1)
    tgt = tgt_ref[...]                              # [tn, 1] int32
    # Per-tile masked pick of the target logit (only one tile contributes per row;
    # padded vocab columns have ids >= V and never match).
    p_sc[...] += jnp.sum(jnp.where(vocab_ids == tgt, logits, 0.0),
                         axis=-1, keepdims=True)

    # Streaming log-sum-exp across vocab tiles.
    m_prev = m_sc[...]
    m_new = jnp.maximum(m_prev, jnp.max(logits, axis=-1, keepdims=True))
    l_sc[...] = l_sc[...] * jnp.exp(m_prev - m_new) + \
        jnp.sum(jnp.exp(logits - m_new), axis=-1, keepdims=True)
    m_sc[...] = m_new

    @pl.when(j == pl.num_programs(1) - 1)
    def _():
        loss_ref[...] = (m_sc[...] + jnp.log(l_sc[...])) - p_sc[...]


def run_out_and_loss(h_flat, w_out_t, b_out, targets_flat):
    """h_flat: [N, H] bf16, w_out_t: [H, Vp] bf16 (pre-padded), b_out: [1, Vp] f32
    (pre-padded with -1e30 on pad columns). Returns per-token CE loss [N] f32."""
    N, H = h_flat.shape
    Vp = w_out_t.shape[1]

    # Token tile: big (256) to amortize W streaming; second-to-last dim multiple of 8.
    tn = 256 if N >= 256 else ((N + 7) // 8) * 8
    n_pad = ((N + tn - 1) // tn) * tn
    # Vocab tile: largest of (1024, 512, 256, 128) dividing the padded vocab.
    tv = next(t for t in (1024, 512, 256, 128) if Vp % t == 0)

    h_p = h_flat if n_pad == N else jnp.pad(h_flat, ((0, n_pad - N), (0, 0)))
    tgt = targets_flat.astype(jnp.int32).reshape(N, 1)
    tgt_p = tgt if n_pad == N else jnp.pad(tgt, ((0, n_pad - N), (0, 0)))

    per_tok = pl.pallas_call(
        ce_kernel,
        out_shape=jax.ShapeDtypeStruct((n_pad, 1), jnp.float32),
        grid_spec=pltpu.PrefetchScalarGridSpec(
            num_scalar_prefetch=0,
            grid=(n_pad // tn, Vp // tv),
            in_specs=[
                pl.BlockSpec((tn, H), lambda i, j: (i, 0)),
                pl.BlockSpec((H, tv), lambda i, j: (0, j)),
                pl.BlockSpec((1, tv), lambda i, j: (0, j)),
                pl.BlockSpec((tn, 1), lambda i, j: (i, 0)),
            ],
            out_specs=pl.BlockSpec((tn, 1), lambda i, j: (i, 0)),
            scratch_shapes=[pltpu.VMEM((tn, 1), jnp.float32)] * 3,
        ),
        compiler_params=pltpu.CompilerParams(
            dimension_semantics=("parallel", "arbitrary"),
            vmem_limit_bytes=_VMEM_LIMIT),
    )(h_p, w_out_t, b_out, tgt_p)
    return per_tok[:N, 0]


# --------------------------------- Model --------------------------------------

def init_params(key, vocab_size, embedding_size, hidden_size):
    keys = jax.random.split(key, 10)
    emb = 0.1 * jax.random.normal(keys[0], (vocab_size, embedding_size), jnp.float32)
    emb = emb.at[0].set(0.0)                        # padding_idx=0
    gru = []
    for i in range(3):
        in_f = embedding_size if i == 0 else hidden_size
        k = jax.random.split(keys[1 + i], 4)
        gru.append(dict(
            # Pre-transposed, gate-stacked weights: [F, 3H] with gate order (r, z, n).
            wih_t=(0.1 * jax.random.normal(k[0], (in_f, 3 * hidden_size),
                                           jnp.float32)).astype(jnp.bfloat16),
            whh_t=(0.1 * jax.random.normal(k[1], (hidden_size, 3 * hidden_size),
                                           jnp.float32)).astype(jnp.bfloat16),
            bih=0.1 * jax.random.normal(k[2], (1, 3 * hidden_size), jnp.float32),
            bhh=0.1 * jax.random.normal(k[3], (1, 3 * hidden_size), jnp.float32),
        ))
    # Output projection: pre-transposed, pre-padded to a lane multiple and pre-cast at init
    # (padded bias columns get -1e30 so they never affect the softmax).
    v_pad = ((vocab_size + 127) // 128) * 128
    w_out = 0.1 * jax.random.normal(keys[8], (hidden_size, vocab_size), jnp.float32)
    w_out_t = jnp.pad(w_out, ((0, 0), (0, v_pad - vocab_size))).astype(jnp.bfloat16)
    b_out = 0.1 * jax.random.normal(keys[9], (vocab_size,), jnp.float32)
    b_out = jnp.pad(b_out, (0, v_pad - vocab_size),
                    constant_values=-1e30).reshape(1, v_pad)
    return dict(embedding=emb, gru=gru, w_out_t=w_out_t, b_out=b_out,
                hidden_size=hidden_size)


def model_forward(params, input_ids, target_ids, log_base=None, time_chunk=16):
    """input_ids, target_ids: int [B, S]; returns loss of shape [1] (mean CE)."""
    B, S = input_ids.shape
    H = params["hidden_size"]
    E = params["embedding"].shape[1]

    # Embedding lookup directly in seq-major order ([S, B, E]); flatten is free.
    # (Best efficiency needs B >= 8 and H, E multiples of 128; toy sizes still run.)
    emb = params["embedding"][input_ids.T]
    x = emb.reshape(S * B, E).astype(jnp.bfloat16)

    # Fused 3-layer GRU stack (single pallas_call; hidden states + weights in VMEM scratch).
    h_flat, s_pad = run_gru_stack(x, params["gru"], B, H, time_chunk)   # [S_pad*B, H] bf16
    if s_pad != S:
        h_flat = h_flat[:S * B]

    # The loss is a mean over tokens, so token order is irrelevant: keep the seq-major
    # flattening and transpose the (tiny, int) targets instead of the activations.
    per_tok = run_out_and_loss(h_flat, params["w_out_t"], params["b_out"],
                               target_ids.T.reshape(-1))
    loss = jnp.mean(per_tok).reshape(1)
    if log_base is not None:
        loss = loss / math.log(log_base)
    return loss


if __name__ == "__main__":
    vocab_size, embedding_size, hidden_size = 64, 32, 32
    B, S = 2, 8

    key = jax.random.PRNGKey(0)
    kp, ki, kt = jax.random.split(key, 3)
    params = init_params(kp, vocab_size, embedding_size, hidden_size)
    input_ids = jax.random.randint(ki, (B, S), 0, vocab_size, dtype=jnp.int32)
    target_ids = jax.random.randint(kt, (B, S), 0, vocab_size, dtype=jnp.int32)

    # time_chunk=4 -> 2 grid steps, exercising the carried-hidden-state path.
    loss = model_forward(params, input_ids, target_ids, time_chunk=4)
    jax.block_until_ready(loss)
    assert loss.shape == (1,)
    assert bool(jnp.isfinite(loss).all())
    print("KERNEL_OK")
</pallas_src>

<mosaic_0001>
module attributes {stable_mosaic.version = 11 : i64} {
  func.func @gru3_kernel(%arg0: i32, %arg1: memref<8x32xbf16, #tpu.memory_space<vmem>>, %arg2: memref<32x96xbf16, #tpu.memory_space<any>>, %arg3: memref<32x96xbf16, #tpu.memory_space<any>>, %arg4: memref<32x96xbf16, #tpu.memory_space<any>>, %arg5: memref<32x96xbf16, #tpu.memory_space<any>>, %arg6: memref<32x96xbf16, #tpu.memory_space<any>>, %arg7: memref<32x96xbf16, #tpu.memory_space<any>>, %arg8: memref<1x96xf32, #tpu.memory_space<vmem>>, %arg9: memref<1x96xf32, #tpu.memory_space<vmem>>, %arg10: memref<1x96xf32, #tpu.memory_space<vmem>>, %arg11: memref<1x96xf32, #tpu.memory_space<vmem>>, %arg12: memref<1x96xf32, #tpu.memory_space<vmem>>, %arg13: memref<1x96xf32, #tpu.memory_space<vmem>>, %arg14: memref<8x32xbf16, #tpu.memory_space<vmem>>, %arg15: memref<2x32xf32, #tpu.memory_space<vmem>>, %arg16: memref<2x32xf32, #tpu.memory_space<vmem>>, %arg17: memref<2x32xf32, #tpu.memory_space<vmem>>, %arg18: memref<32x96xbf16, #tpu.memory_space<vmem>>, %arg19: memref<32x96xbf16, #tpu.memory_space<vmem>>, %arg20: memref<32x96xbf16, #tpu.memory_space<vmem>>, %arg21: memref<32x96xbf16, #tpu.memory_space<vmem>>, %arg22: memref<32x96xbf16, #tpu.memory_space<vmem>>, %arg23: memref<32x96xbf16, #tpu.memory_space<vmem>>, %arg24: memref<6x!tpu.dma_semaphore, #tpu.memory_space<semaphore_mem>>) attributes {dimension_semantics = [#tpu.dimension_semantics<arbitrary>], iteration_bounds = array<i64: 2>, scalar_prefetch = 0 : i64, scratch_operands = 10 : i64, tpu.core_type = #tpu.core_type<tc>, window_params = [{transform_indices = @transform_0, window_bounds = array<i64: 8, 32>}, {}, {}, {}, {}, {}, {}, {pipeline_mode = #tpu.pipeline_mode<synchronous>, transform_indices = @transform_7, window_bounds = array<i64: 1, 96>}, {pipeline_mode = #tpu.pipeline_mode<synchronous>, transform_indices = @transform_8, window_bounds = array<i64: 1, 96>}, {pipeline_mode = #tpu.pipeline_mode<synchronous>, transform_indices = @transform_9, window_bounds = array<i64: 1, 96>}, {pipeline_mode = #tpu.pipeline_mode<synchronous>, transform_indices = @transform_10, window_bounds = array<i64: 1, 96>}, {pipeline_mode = #tpu.pipeline_mode<synchronous>, transform_indices = @transform_11, window_bounds = array<i64: 1, 96>}, {pipeline_mode = #tpu.pipeline_mode<synchronous>, transform_indices = @transform_12, window_bounds = array<i64: 1, 96>}, {transform_indices = @transform_13, window_bounds = array<i64: 8, 32>}]} {
    %c0_i32 = arith.constant 0 : i32
    %0 = arith.cmpi eq, %arg0, %c0_i32 : i32
    %1 = arith.extui %0 : i1 to i32
    %c0_i32_0 = arith.constant 0 : i32
    %2 = arith.cmpi ne, %1, %c0_i32_0 : i32
    scf.if %2 {
      %cst_78 = arith.constant 0.000000e+00 : f32
      %386 = vector.broadcast %cst_78 : f32 to vector<2x32xf32>
      %c0_79 = arith.constant 0 : index
      %c0_80 = arith.constant 0 : index
      %387 = vector.load %arg15[%c0_79, %c0_80] : memref<2x32xf32, #tpu.memory_space<vmem>>, vector<2x32xf32>
      tpu.vector_store %arg15[%c0_79, %c0_80], %386 {strides = array<i32>} : memref<2x32xf32, #tpu.memory_space<vmem>>, vector<2x32xf32>,
      %cst_81 = arith.constant 0.000000e+00 : f32
      %388 = vector.broadcast %cst_81 : f32 to vector<2x32xf32>
      %c0_82 = arith.constant 0 : index
      %c0_83 = arith.constant 0 : index
      %389 = vector.load %arg16[%c0_82, %c0_83] : memref<2x32xf32, #tpu.memory_space<vmem>>, vector<2x32xf32>
      tpu.vector_store %arg16[%c0_82, %c0_83], %388 {strides = array<i32>} : memref<2x32xf32, #tpu.memory_space<vmem>>, vector<2x32xf32>,
      %cst_84 = arith.constant 0.000000e+00 : f32
      %390 = vector.broadcast %cst_84 : f32 to vector<2x32xf32>
      %c0_85 = arith.constant 0 : index
      %c0_86 = arith.constant 0 : index
      %391 = vector.load %arg17[%c0_85, %c0_86] : memref<2x32xf32, #tpu.memory_space<vmem>>, vector<2x32xf32>
      tpu.vector_store %arg17[%c0_85, %c0_86], %390 {strides = array<i32>} : memref<2x32xf32, #tpu.memory_space<vmem>>, vector<2x32xf32>,
      %c0_i32_87 = arith.constant 0 : i32
      %392 = tpu.memref_slice %arg24[%c0_i32_87] : memref<6x!tpu.dma_semaphore, #tpu.memory_space<semaphore_mem>> -> memref<1x!tpu.dma_semaphore, #tpu.memory_space<semaphore_mem>>
      %393 = tpu.memref_squeeze %392 : memref<1x!tpu.dma_semaphore, #tpu.memory_space<semaphore_mem>> -> memref<!tpu.dma_semaphore, #tpu.memory_space<semaphore_mem>>
      tpu.enqueue_dma source(%arg2 : memref<32x96xbf16, #tpu.memory_space<any>>) target(%arg18 : memref<32x96xbf16, #tpu.memory_space<vmem>>) target_semaphore(%393 : memref<!tpu.dma_semaphore, #tpu.memory_space<semaphore_mem>>)
      %c1_i32 = arith.constant 1 : i32
      %394 = tpu.memref_slice %arg24[%c1_i32] : memref<6x!tpu.dma_semaphore, #tpu.memory_space<semaphore_mem>> -> memref<1x!tpu.dma_semaphore, #tpu.memory_space<semaphore_mem>>
      %395 = tpu.memref_squeeze %394 : memref<1x!tpu.dma_semaphore, #tpu.memory_space<semaphore_mem>> -> memref<!tpu.dma_semaphore, #tpu.memory_space<semaphore_mem>>
      tpu.enqueue_dma source(%arg3 : memref<32x96xbf16, #tpu.memory_space<any>>) target(%arg19 : memref<32x96xbf16, #tpu.memory_space<vmem>>) target_semaphore(%395 : memref<!tpu.dma_semaphore, #tpu.memory_space<semaphore_mem>>)
      %c2_i32 = arith.constant 2 : i32
      %396 = tpu.memref_slice %arg24[%c2_i32] : memref<6x!tpu.dma_semaphore, #tpu.memory_space<semaphore_mem>> -> memref<1x!tpu.dma_semaphore, #tpu.memory_space<semaphore_mem>>
      %397 = tpu.memref_squeeze %396 : memref<1x!tpu.dma_semaphore, #tpu.memory_space<semaphore_mem>> -> memref<!tpu.dma_semaphore, #tpu.memory_space<semaphore_mem>>
      tpu.enqueue_dma source(%arg4 : memref<32x96xbf16, #tpu.memory_space<any>>) target(%arg20 : memref<32x96xbf16, #tpu.memory_space<vmem>>) target_semaphore(%397 : memref<!tpu.dma_semaphore, #tpu.memory_space<semaphore_mem>>)
      %c3_i32 = arith.constant 3 : i32
      %398 = tpu.memref_slice %arg24[%c3_i32] : memref<6x!tpu.dma_semaphore, #tpu.memory_space<semaphore_mem>> -> memref<1x!tpu.dma_semaphore, #tpu.memory_space<semaphore_mem>>
      %399 = tpu.memref_squeeze %398 : memref<1x!tpu.dma_semaphore, #tpu.memory_space<semaphore_mem>> -> memref<!tpu.dma_semaphore, #tpu.memory_space<semaphore_mem>>
      tpu.enqueue_dma source(%arg5 : memref<32x96xbf16, #tpu.memory_space<any>>) target(%arg21 : memref<32x96xbf16, #tpu.memory_space<vmem>>) target_semaphore(%399 : memref<!tpu.dma_semaphore, #tpu.memory_space<semaphore_mem>>)
      %c4_i32 = arith.constant 4 : i32
      %400 = tpu.memref_slice %arg24[%c4_i32] : memref<6x!tpu.dma_semaphore, #tpu.memory_space<semaphore_mem>> -> memref<1x!tpu.dma_semaphore, #tpu.memory_space<semaphore_mem>>
      %401 = tpu.memref_squeeze %400 : memref<1x!tpu.dma_semaphore, #tpu.memory_space<semaphore_mem>> -> memref<!tpu.dma_semaphore, #tpu.memory_space<semaphore_mem>>
      tpu.enqueue_dma source(%arg6 : memref<32x96xbf16, #tpu.memory_space<any>>) target(%arg22 : memref<32x96xbf16, #tpu.memory_space<vmem>>) target_semaphore(%401 : memref<!tpu.dma_semaphore, #tpu.memory_space<semaphore_mem>>)
      %c5_i32 = arith.constant 5 : i32
      %402 = tpu.memref_slice %arg24[%c5_i32] : memref<6x!tpu.dma_semaphore, #tpu.memory_space<semaphore_mem>> -> memref<1x!tpu.dma_semaphore, #tpu.memory_space<semaphore_mem>>
      %403 = tpu.memref_squeeze %402 : memref<1x!tpu.dma_semaphore, #tpu.memory_space<semaphore_mem>> -> memref<!tpu.dma_semaphore, #tpu.memory_space<semaphore_mem>>
      tpu.enqueue_dma source(%arg7 : memref<32x96xbf16, #tpu.memory_space<any>>) target(%arg23 : memref<32x96xbf16, #tpu.memory_space<vmem>>) target_semaphore(%403 : memref<!tpu.dma_semaphore, #tpu.memory_space<semaphore_mem>>)
      %c0_i32_88 = arith.constant 0 : i32
      %404 = tpu.memref_slice %arg24[%c0_i32_88] : memref<6x!tpu.dma_semaphore, #tpu.memory_space<semaphore_mem>> -> memref<1x!tpu.dma_semaphore, #tpu.memory_space<semaphore_mem>>
      %405 = tpu.memref_squeeze %404 : memref<1x!tpu.dma_semaphore, #tpu.memory_space<semaphore_mem>> -> memref<!tpu.dma_semaphore, #tpu.memory_space<semaphore_mem>>
      tpu.wait_dma2 semaphore(%405 : memref<!tpu.dma_semaphore, #tpu.memory_space<semaphore_mem>>) src(%arg2 : memref<32x96xbf16, #tpu.memory_space<any>>) dst(%arg18 : memref<32x96xbf16, #tpu.memory_space<vmem>>)
      %c1_i32_89 = arith.constant 1 : i32
      %406 = tpu.memref_slice %arg24[%c1_i32_89] : memref<6x!tpu.dma_semaphore, #tpu.memory_space<semaphore_mem>> -> memref<1x!tpu.dma_semaphore, #tpu.memory_space<semaphore_mem>>
      %407 = tpu.memref_squeeze %406 : memref<1x!tpu.dma_semaphore, #tpu.memory_space<semaphore_mem>> -> memref<!tpu.dma_semaphore, #tpu.memory_space<semaphore_mem>>
      tpu.wait_dma2 semaphore(%407 : memref<!tpu.dma_semaphore, #tpu.memory_space<semaphore_mem>>) src(%arg3 : memref<32x96xbf16, #tpu.memory_space<any>>) dst(%arg19 : memref<32x96xbf16, #tpu.memory_space<vmem>>)
      %c2_i32_90 = arith.constant 2 : i32
      %408 = tpu.memref_slice %arg24[%c2_i32_90] : memref<6x!tpu.dma_semaphore, #tpu.memory_space<semaphore_mem>> -> memref<1x!tpu.dma_semaphore, #tpu.memory_space<semaphore_mem>>
      %409 = tpu.memref_squeeze %408 : memref<1x!tpu.dma_semaphore, #tpu.memory_space<semaphore_mem>> -> memref<!tpu.dma_semaphore, #tpu.memory_space<semaphore_mem>>
      tpu.wait_dma2 semaphore(%409 : memref<!tpu.dma_semaphore, #tpu.memory_space<semaphore_mem>>) src(%arg4 : memref<32x96xbf16, #tpu.memory_space<any>>) dst(%arg20 : memref<32x96xbf16, #tpu.memory_space<vmem>>)
      %c3_i32_91 = arith.constant 3 : i32
      %410 = tpu.memref_slice %arg24[%c3_i32_91] : memref<6x!tpu.dma_semaphore, #tpu.memory_space<semaphore_mem>> -> memref<1x!tpu.dma_semaphore, #tpu.memory_space<semaphore_mem>>
      %411 = tpu.memref_squeeze %410 : memref<1x!tpu.dma_semaphore, #tpu.memory_space<semaphore_mem>> -> memref<!tpu.dma_semaphore, #tpu.memory_space<semaphore_mem>>
      tpu.wait_dma2 semaphore(%411 : memref<!tpu.dma_semaphore, #tpu.memory_space<semaphore_mem>>) src(%arg5 : memref<32x96xbf16, #tpu.memory_space<any>>) dst(%arg21 : memref<32x96xbf16, #tpu.memory_space<vmem>>)
      %c4_i32_92 = arith.constant 4 : i32
      %412 = tpu.memref_slice %arg24[%c4_i32_92] : memref<6x!tpu.dma_semaphore, #tpu.memory_space<semaphore_mem>> -> memref<1x!tpu.dma_semaphore, #tpu.memory_space<semaphore_mem>>
      %413 = tpu.memref_squeeze %412 : memref<1x!tpu.dma_semaphore, #tpu.memory_space<semaphore_mem>> -> memref<!tpu.dma_semaphore, #tpu.memory_space<semaphore_mem>>
      tpu.wait_dma2 semaphore(%413 : memref<!tpu.dma_semaphore, #tpu.memory_space<semaphore_mem>>) src(%arg6 : memref<32x96xbf16, #tpu.memory_space<any>>) dst(%arg22 : memref<32x96xbf16, #tpu.memory_space<vmem>>)
      %c5_i32_93 = arith.constant 5 : i32
      %414 = tpu.memref_slice %arg24[%c5_i32_93] : memref<6x!tpu.dma_semaphore, #tpu.memory_space<semaphore_mem>> -> memref<1x!tpu.dma_semaphore, #tpu.memory_space<semaphore_mem>>
      %415 = tpu.memref_squeeze %414 : memref<1x!tpu.dma_semaphore, #tpu.memory_space<semaphore_mem>> -> memref<!tpu.dma_semaphore, #tpu.memory_space<semaphore_mem>>
      tpu.wait_dma2 semaphore(%415 : memref<!tpu.dma_semaphore, #tpu.memory_space<semaphore_mem>>) src(%arg7 : memref<32x96xbf16, #tpu.memory_space<any>>) dst(%arg23 : memref<32x96xbf16, #tpu.memory_space<vmem>>)
    } else {
    }
    %c0 = arith.constant 0 : index
    %c0_1 = arith.constant 0 : index
    %3 = vector.load %arg1[%c0, %c0_1] : memref<8x32xbf16, #tpu.memory_space<vmem>>, vector<8x32xbf16>
    %c0_2 = arith.constant 0 : index
    %c0_3 = arith.constant 0 : index
    %4 = vector.load %arg18[%c0_2, %c0_3] : memref<32x96xbf16, #tpu.memory_space<vmem>>, vector<32x96xbf16>
    %cst = arith.constant dense<0.000000e+00> : vector<8x96xf32>
    %5 = tpu.matmul %3, %4, %cst {dimension_numbers = #tpu.dot_dimension_numbers<[1], [0], [0], [1], [0, 0, 1, 1], [], []>} : vector<8x32xbf16>, vector<32x96xbf16>, vector<8x96xf32> -> vector<8x96xf32>
    %c0_4 = arith.constant 0 : index
    %c0_5 = arith.constant 0 : index
    %6 = vector.load %arg8[%c0_4, %c0_5] : memref<1x96xf32, #tpu.memory_space<vmem>>, vector<1x96xf32>
    %7 = vector.broadcast %6 : vector<1x96xf32> to vector<8x96xf32>
    %8 = arith.addf %5, %7 : vector<8x96xf32>
    %c0_6 = arith.constant 0 : index
    %c0_7 = arith.constant 0 : index
    %9 = vector.load %arg19[%c0_6, %c0_7] : memref<32x96xbf16, #tpu.memory_space<vmem>>, vector<32x96xbf16>
    %c0_8 = arith.constant 0 : index
    %c0_9 = arith.constant 0 : index
    %10 = vector.load %arg9[%c0_8, %c0_9] : memref<1x96xf32, #tpu.memory_space<vmem>>, vector<1x96xf32>
    %c0_10 = arith.constant 0 : index
    %c0_11 = arith.constant 0 : index
    %11 = vector.load %arg15[%c0_10, %c0_11] : memref<2x32xf32, #tpu.memory_space<vmem>>, vector<2x32xf32>
    %12 = vector.extract_strided_slice %8 {offsets = [0, 0], sizes = [2, 96], strides = [1, 1]} : vector<8x96xf32> to vector<2x96xf32>
    %13 = arith.truncf %11 : vector<2x32xf32> to vector<2x32xbf16>
    %cst_12 = arith.constant dense<0.000000e+00> : vector<2x96xf32>
    %14 = tpu.matmul %13, %9, %cst_12 {dimension_numbers = #tpu.dot_dimension_numbers<[1], [0], [0], [1], [0, 0, 1, 1], [], []>} : vector<2x32xbf16>, vector<32x96xbf16>, vector<2x96xf32> -> vector<2x96xf32>
    %15 = vector.broadcast %10 : vector<1x96xf32> to vector<2x96xf32>
    %16 = arith.addf %14, %15 : vector<2x96xf32>
    %17 = vector.extract_strided_slice %12 {offsets = [0, 0], sizes = [2, 32], strides = [1, 1]} : vector<2x96xf32> to vector<2x32xf32>
    %18 = vector.extract_strided_slice %16 {offsets = [0, 0], sizes = [2, 32], strides = [1, 1]} : vector<2x96xf32> to vector<2x32xf32>
    %19 = arith.addf %17, %18 : vector<2x32xf32>
    %20 = arith.negf %19 : vector<2x32xf32>
    %21 = math.exp %20 : vector<2x32xf32>
    %cst_13 = arith.constant 1.000000e+00 : f32
    %22 = vector.broadcast %cst_13 : f32 to vector<2x32xf32>
    %23 = arith.addf %22, %21 : vector<2x32xf32>
    %24 = arith.divf %22, %23 : vector<2x32xf32>
    %25 = vector.extract_strided_slice %12 {offsets = [0, 32], sizes = [2, 32], strides = [1, 1]} : vector<2x96xf32> to vector<2x32xf32>
    %26 = vector.extract_strided_slice %16 {offsets = [0, 32], sizes = [2, 32], strides = [1, 1]} : vector<2x96xf32> to vector<2x32xf32>
    %27 = arith.addf %25, %26 : vector<2x32xf32>
    %28 = arith.negf %27 : vector<2x32xf32>
    %29 = math.exp %28 : vector<2x32xf32>
    %cst_14 = arith.constant 1.000000e+00 : f32
    %30 = vector.broadcast %cst_14 : f32 to vector<2x32xf32>
    %31 = arith.addf %30, %29 : vector<2x32xf32>
    %32 = arith.divf %30, %31 : vector<2x32xf32>
    %33 = vector.extract_strided_slice %12 {offsets = [0, 64], sizes = [2, 32], strides = [1, 1]} : vector<2x96xf32> to vector<2x32xf32>
    %34 = vector.extract_strided_slice %16 {offsets = [0, 64], sizes = [2, 32], strides = [1, 1]} : vector<2x96xf32> to vector<2x32xf32>
    %35 = arith.mulf %24, %34 : vector<2x32xf32>
    %36 = arith.addf %33, %35 : vector<2x32xf32>
    %37 = math.tanh %36 : vector<2x32xf32>
    %38 = arith.subf %11, %37 : vector<2x32xf32>
    %39 = arith.mulf %32, %38 : vector<2x32xf32>
    %40 = arith.addf %37, %39 : vector<2x32xf32>
    %41 = vector.extract_strided_slice %8 {offsets = [2, 0], sizes = [2, 96], strides = [1, 1]} : vector<8x96xf32> to vector<2x96xf32>
    %42 = arith.truncf %40 : vector<2x32xf32> to vector<2x32xbf16>
    %cst_15 = arith.constant dense<0.000000e+00> : vector<2x96xf32>
    %43 = tpu.matmul %42, %9, %cst_15 {dimension_numbers = #tpu.dot_dimension_numbers<[1], [0], [0], [1], [0, 0, 1, 1], [], []>} : vector<2x32xbf16>, vector<32x96xbf16>, vector<2x96xf32> -> vector<2x96xf32>
    %44 = vector.broadcast %10 : vector<1x96xf32> to vector<2x96xf32>
    %45 = arith.addf %43, %44 : vector<2x96xf32>
    %46 = vector.extract_strided_slice %41 {offsets = [0, 0], sizes = [2, 32], strides = [1, 1]} : vector<2x96xf32> to vector<2x32xf32>
    %47 = vector.extract_strided_slice %45 {offsets = [0, 0], sizes = [2, 32], strides = [1, 1]} : vector<2x96xf32> to vector<2x32xf32>
    %48 = arith.addf %46, %47 : vector<2x32xf32>
    %49 = arith.negf %48 : vector<2x32xf32>
    %50 = math.exp %49 : vector<2x32xf32>
    %cst_16 = arith.constant 1.000000e+00 : f32
    %51 = vector.broadcast %cst_16 : f32 to vector<2x32xf32>
    %52 = arith.addf %51, %50 : vector<2x32xf32>
    %53 = arith.divf %51, %52 : vector<2x32xf32>
    %54 = vector.extract_strided_slice %41 {offsets = [0, 32], sizes = [2, 32], strides = [1, 1]} : vector<2x96xf32> to vector<2x32xf32>
    %55 = vector.extract_strided_slice %45 {offsets = [0, 32], sizes = [2, 32], strides = [1, 1]} : vector<2x96xf32> to vector<2x32xf32>
    %56 = arith.addf %54, %55 : vector<2x32xf32>
    %57 = arith.negf %56 : vector<2x32xf32>
    %58 = math.exp %57 : vector<2x32xf32>
    %cst_17 = arith.constant 1.000000e+00 : f32
    %59 = vector.broadcast %cst_17 : f32 to vector<2x32xf32>
    %60 = arith.addf %59, %58 : vector<2x32xf32>
    %61 = arith.divf %59, %60 : vector<2x32xf32>
    %62 = vector.extract_strided_slice %41 {offsets = [0, 64], sizes = [2, 32], strides = [1, 1]} : vector<2x96xf32> to vector<2x32xf32>
    %63 = vector.extract_strided_slice %45 {offsets = [0, 64], sizes = [2, 32], strides = [1, 1]} : vector<2x96xf32> to vector<2x32xf32>
    %64 = arith.mulf %53, %63 : vector<2x32xf32>
    %65 = arith.addf %62, %64 : vector<2x32xf32>
    %66 = math.tanh %65 : vector<2x32xf32>
    %67 = arith.subf %40, %66 : vector<2x32xf32>
    %68 = arith.mulf %61, %67 : vector<2x32xf32>
    %69 = arith.addf %66, %68 : vector<2x32xf32>
    %70 = vector.extract_strided_slice %8 {offsets = [4, 0], sizes = [2, 96], strides = [1, 1]} : vector<8x96xf32> to vector<2x96xf32>
    %71 = arith.truncf %69 : vector<2x32xf32> to vector<2x32xbf16>
    %cst_18 = arith.constant dense<0.000000e+00> : vector<2x96xf32>
    %72 = tpu.matmul %71, %9, %cst_18 {dimension_numbers = #tpu.dot_dimension_numbers<[1], [0], [0], [1], [0, 0, 1, 1], [], []>} : vector<2x32xbf16>, vector<32x96xbf16>, vector<2x96xf32> -> vector<2x96xf32>
    %73 = vector.broadcast %10 : vector<1x96xf32> to vector<2x96xf32>
    %74 = arith.addf %72, %73 : vector<2x96xf32>
    %75 = vector.extract_strided_slice %70 {offsets = [0, 0], sizes = [2, 32], strides = [1, 1]} : vector<2x96xf32> to vector<2x32xf32>
    %76 = vector.extract_strided_slice %74 {offsets = [0, 0], sizes = [2, 32], strides = [1, 1]} : vector<2x96xf32> to vector<2x32xf32>
    %77 = arith.addf %75, %76 : vector<2x32xf32>
    %78 = arith.negf %77 : vector<2x32xf32>
    %79 = math.exp %78 : vector<2x32xf32>
    %cst_19 = arith.constant 1.000000e+00 : f32
    %80 = vector.broadcast %cst_19 : f32 to vector<2x32xf32>
    %81 = arith.addf %80, %79 : vector<2x32xf32>
    %82 = arith.divf %80, %81 : vector<2x32xf32>
    %83 = vector.extract_strided_slice %70 {offsets = [0, 32], sizes = [2, 32], strides = [1, 1]} : vector<2x96xf32> to vector<2x32xf32>
    %84 = vector.extract_strided_slice %74 {offsets = [0, 32], sizes = [2, 32], strides = [1, 1]} : vector<2x96xf32> to vector<2x32xf32>
    %85 = arith.addf %83, %84 : vector<2x32xf32>
    %86 = arith.negf %85 : vector<2x32xf32>
    %87 = math.exp %86 : vector<2x32xf32>
    %cst_20 = arith.constant 1.000000e+00 : f32
    %88 = vector.broadcast %cst_20 : f32 to vector<2x32xf32>
    %89 = arith.addf %88, %87 : vector<2x32xf32>
    %90 = arith.divf %88, %89 : vector<2x32xf32>
    %91 = vector.extract_strided_slice %70 {offsets = [0, 64], sizes = [2, 32], strides = [1, 1]} : vector<2x96xf32> to vector<2x32xf32>
    %92 = vector.extract_strided_slice %74 {offsets = [0, 64], sizes = [2, 32], strides = [1, 1]} : vector<2x96xf32> to vector<2x32xf32>
    %93 = arith.mulf %82, %92 : vector<2x32xf32>
    %94 = arith.addf %91, %93 : vector<2x32xf32>
    %95 = math.tanh %94 : vector<2x32xf32>
    %96 = arith.subf %69, %95 : vector<2x32xf32>
    %97 = arith.mulf %90, %96 : vector<2x32xf32>
    %98 = arith.addf %95, %97 : vector<2x32xf32>
    %99 = vector.extract_strided_slice %8 {offsets = [6, 0], sizes = [2, 96], strides = [1, 1]} : vector<8x96xf32> to vector<2x96xf32>
    %100 = arith.truncf %98 : vector<2x32xf32> to vector<2x32xbf16>
    %cst_21 = arith.constant dense<0.000000e+00> : vector<2x96xf32>
    %101 = tpu.matmul %100, %9, %cst_21 {dimension_numbers = #tpu.dot_dimension_numbers<[1], [0], [0], [1], [0, 0, 1, 1], [], []>} : vector<2x32xbf16>, vector<32x96xbf16>, vector<2x96xf32> -> vector<2x96xf32>
    %102 = vector.broadcast %10 : vector<1x96xf32> to vector<2x96xf32>
    %103 = arith.addf %101, %102 : vector<2x96xf32>
    %104 = vector.extract_strided_slice %99 {offsets = [0, 0], sizes = [2, 32], strides = [1, 1]} : vector<2x96xf32> to vector<2x32xf32>
    %105 = vector.extract_strided_slice %103 {offsets = [0, 0], sizes = [2, 32], strides = [1, 1]} : vector<2x96xf32> to vector<2x32xf32>
    %106 = arith.addf %104, %105 : vector<2x32xf32>
    %107 = arith.negf %106 : vector<2x32xf32>
    %108 = math.exp %107 : vector<2x32xf32>
    %cst_22 = arith.constant 1.000000e+00 : f32
    %109 = vector.broadcast %cst_22 : f32 to vector<2x32xf32>
    %110 = arith.addf %109, %108 : vector<2x32xf32>
    %111 = arith.divf %109, %110 : vector<2x32xf32>
    %112 = vector.extract_strided_slice %99 {offsets = [0, 32], sizes = [2, 32], strides = [1, 1]} : vector<2x96xf32> to vector<2x32xf32>
    %113 = vector.extract_strided_slice %103 {offsets = [0, 32], sizes = [2, 32], strides = [1, 1]} : vector<2x96xf32> to vector<2x32xf32>
    %114 = arith.addf %112, %113 : vector<2x32xf32>
    %115 = arith.negf %114 : vector<2x32xf32>
    %116 = math.exp %115 : vector<2x32xf32>
    %cst_23 = arith.constant 1.000000e+00 : f32
    %117 = vector.broadcast %cst_23 : f32 to vector<2x32xf32>
    %118 = arith.addf %117, %116 : vector<2x32xf32>
    %119 = arith.divf %117, %118 : vector<2x32xf32>
    %120 = vector.extract_strided_slice %99 {offsets = [0, 64], sizes = [2, 32], strides = [1, 1]} : vector<2x96xf32> to vector<2x32xf32>
    %121 = vector.extract_strided_slice %103 {offsets = [0, 64], sizes = [2, 32], strides = [1, 1]} : vector<2x96xf32> to vector<2x32xf32>
    %122 = arith.mulf %111, %121 : vector<2x32xf32>
    %123 = arith.addf %120, %122 : vector<2x32xf32>
    %124 = math.tanh %123 : vector<2x32xf32>
    %125 = arith.subf %98, %124 : vector<2x32xf32>
    %126 = arith.mulf %119, %125 : vector<2x32xf32>
    %127 = arith.addf %124, %126 : vector<2x32xf32>
    %c0_24 = arith.constant 0 : index
    %c0_25 = arith.constant 0 : index
    %128 = vector.load %arg15[%c0_24, %c0_25] : memref<2x32xf32, #tpu.memory_space<vmem>>, vector<2x32xf32>
    tpu.vector_store %arg15[%c0_24, %c0_25], %127 {strides = array<i32>} : memref<2x32xf32, #tpu.memory_space<vmem>>, vector<2x32xf32>,
    %129 = tpu.concatenate %40, %69, %98, %127 in 0 : vector<2x32xf32>, vector<2x32xf32>, vector<2x32xf32>, vector<2x32xf32> -> vector<8x32xf32>
    %130 = arith.truncf %129 : vector<8x32xf32> to vector<8x32xbf16>
    %c0_26 = arith.constant 0 : index
    %c0_27 = arith.constant 0 : index
    %131 = vector.load %arg20[%c0_26, %c0_27] : memref<32x96xbf16, #tpu.memory_space<vmem>>, vector<32x96xbf16>
    %cst_28 = arith.constant dense<0.000000e+00> : vector<8x96xf32>
    %132 = tpu.matmul %130, %131, %cst_28 {dimension_numbers = #tpu.dot_dimension_numbers<[1], [0], [0], [1], [0, 0, 1, 1], [], []>} : vector<8x32xbf16>, vector<32x96xbf16>, vector<8x96xf32> -> vector<8x96xf32>
    %c0_29 = arith.constant 0 : index
    %c0_30 = arith.constant 0 : index
    %133 = vector.load %arg10[%c0_29, %c0_30] : memref<1x96xf32, #tpu.memory_space<vmem>>, vector<1x96xf32>
    %134 = vector.broadcast %133 : vector<1x96xf32> to vector<8x96xf32>
    %135 = arith.addf %132, %134 : vector<8x96xf32>
    %c0_31 = arith.constant 0 : index
    %c0_32 = arith.constant 0 : index
    %136 = vector.load %arg21[%c0_31, %c0_32] : memref<32x96xbf16, #tpu.memory_space<vmem>>, vector<32x96xbf16>
    %c0_33 = arith.constant 0 : index
    %c0_34 = arith.constant 0 : index
    %137 = vector.load %arg11[%c0_33, %c0_34] : memref<1x96xf32, #tpu.memory_space<vmem>>, vector<1x96xf32>
    %c0_35 = arith.constant 0 : index
    %c0_36 = arith.constant 0 : index
    %138 = vector.load %arg16[%c0_35, %c0_36] : memref<2x32xf32, #tpu.memory_space<vmem>>, vector<2x32xf32>
    %139 = vector.extract_strided_slice %135 {offsets = [0, 0], sizes = [2, 96], strides = [1, 1]} : vector<8x96xf32> to vector<2x96xf32>
    %140 = arith.truncf %138 : vector<2x32xf32> to vector<2x32xbf16>
    %cst_37 = arith.constant dense<0.000000e+00> : vector<2x96xf32>
    %141 = tpu.matmul %140, %136, %cst_37 {dimension_numbers = #tpu.dot_dimension_numbers<[1], [0], [0], [1], [0, 0, 1, 1], [], []>} : vector<2x32xbf16>, vector<32x96xbf16>, vector<2x96xf32> -> vector<2x96xf32>
    %142 = vector.broadcast %137 : vector<1x96xf32> to vector<2x96xf32>
    %143 = arith.addf %141, %142 : vector<2x96xf32>
    %144 = vector.extract_strided_slice %139 {offsets = [0, 0], sizes = [2, 32], strides = [1, 1]} : vector<2x96xf32> to vector<2x32xf32>
    %145 = vector.extract_strided_slice %143 {offsets = [0, 0], sizes = [2, 32], strides = [1, 1]} : vector<2x96xf32> to vector<2x32xf32>
    %146 = arith.addf %144, %145 : vector<2x32xf32>
    %147 = arith.negf %146 : vector<2x32xf32>
    %148 = math.exp %147 : vector<2x32xf32>
    %cst_38 = arith.constant 1.000000e+00 : f32
    %149 = vector.broadcast %cst_38 : f32 to vector<2x32xf32>
    %150 = arith.addf %149, %148 : vector<2x32xf32>
    %151 = arith.divf %149, %150 : vector<2x32xf32>
    %152 = vector.extract_strided_slice %139 {offsets = [0, 32], sizes = [2, 32], strides = [1, 1]} : vector<2x96xf32> to vector<2x32xf32>
    %153 = vector.extract_strided_slice %143 {offsets = [0, 32], sizes = [2, 32], strides = [1, 1]} : vector<2x96xf32> to vector<2x32xf32>
    %154 = arith.addf %152, %153 : vector<2x32xf32>
    %155 = arith.negf %154 : vector<2x32xf32>
    %156 = math.exp %155 : vector<2x32xf32>
    %cst_39 = arith.constant 1.000000e+00 : f32
    %157 = vector.broadcast %cst_39 : f32 to vector<2x32xf32>
    %158 = arith.addf %157, %156 : vector<2x32xf32>
    %159 = arith.divf %157, %158 : vector<2x32xf32>
    %160 = vector.extract_strided_slice %139 {offsets = [0, 64], sizes = [2, 32], strides = [1, 1]} : vector<2x96xf32> to vector<2x32xf32>
    %161 = vector.extract_strided_slice %143 {offsets = [0, 64], sizes = [2, 32], strides = [1, 1]} : vector<2x96xf32> to vector<2x32xf32>
    %162 = arith.mulf %151, %161 : vector<2x32xf32>
    %163 = arith.addf %160, %162 : vector<2x32xf32>
    %164 = math.tanh %163 : vector<2x32xf32>
    %165 = arith.subf %138, %164 : vector<2x32xf32>
    %166 = arith.mulf %159, %165 : vector<2x32xf32>
    %167 = arith.addf %164, %166 : vector<2x32xf32>
    %168 = vector.extract_strided_slice %135 {offsets = [2, 0], sizes = [2, 96], strides = [1, 1]} : vector<8x96xf32> to vector<2x96xf32>
    %169 = arith.truncf %167 : vector<2x32xf32> to vector<2x32xbf16>
    %cst_40 = arith.constant dense<0.000000e+00> : vector<2x96xf32>
    %170 = tpu.matmul %169, %136, %cst_40 {dimension_numbers = #tpu.dot_dimension_numbers<[1], [0], [0], [1], [0, 0, 1, 1], [], []>} : vector<2x32xbf16>, vector<32x96xbf16>, vector<2x96xf32> -> vector<2x96xf32>
    %171 = vector.broadcast %137 : vector<1x96xf32> to vector<2x96xf32>
    %172 = arith.addf %170, %171 : vector<2x96xf32>
    %173 = vector.extract_strided_slice %168 {offsets = [0, 0], sizes = [2, 32], strides = [1, 1]} : vector<2x96xf32> to vector<2x32xf32>
    %174 = vector.extract_strided_slice %172 {offsets = [0, 0], sizes = [2, 32], strides = [1, 1]} : vector<2x96xf32> to vector<2x32xf32>
    %175 = arith.addf %173, %174 : vector<2x32xf32>
    %176 = arith.negf %175 : vector<2x32xf32>
    %177 = math.exp %176 : vector<2x32xf32>
    %cst_41 = arith.constant 1.000000e+00 : f32
    %178 = vector.broadcast %cst_41 : f32 to vector<2x32xf32>
    %179 = arith.addf %178, %177 : vector<2x32xf32>
    %180 = arith.divf %178, %179 : vector<2x32xf32>
    %181 = vector.extract_strided_slice %168 {offsets = [0, 32], sizes = [2, 32], strides = [1, 1]} : vector<2x96xf32> to vector<2x32xf32>
    %182 = vector.extract_strided_slice %172 {offsets = [0, 32], sizes = [2, 32], strides = [1, 1]} : vector<2x96xf32> to vector<2x32xf32>
    %183 = arith.addf %181, %182 : vector<2x32xf32>
    %184 = arith.negf %183 : vector<2x32xf32>
    %185 = math.exp %184 : vector<2x32xf32>
    %cst_42 = arith.constant 1.000000e+00 : f32
    %186 = vector.broadcast %cst_42 : f32 to vector<2x32xf32>
    %187 = arith.addf %186, %185 : vector<2x32xf32>
    %188 = arith.divf %186, %187 : vector<2x32xf32>
    %189 = vector.extract_strided_slice %168 {offsets = [0, 64], sizes = [2, 32], strides = [1, 1]} : vector<2x96xf32> to vector<2x32xf32>
    %190 = vector.extract_strided_slice %172 {offsets = [0, 64], sizes = [2, 32], strides = [1, 1]} : vector<2x96xf32> to vector<2x32xf32>
    %191 = arith.mulf %180, %190 : vector<2x32xf32>
    %192 = arith.addf %189, %191 : vector<2x32xf32>
    %193 = math.tanh %192 : vector<2x32xf32>
    %194 = arith.subf %167, %193 : vector<2x32xf32>
    %195 = arith.mulf %188, %194 : vector<2x32xf32>
    %196 = arith.addf %193, %195 : vector<2x32xf32>
    %197 = vector.extract_strided_slice %135 {offsets = [4, 0], sizes = [2, 96], strides = [1, 1]} : vector<8x96xf32> to vector<2x96xf32>
    %198 = arith.truncf %196 : vector<2x32xf32> to vector<2x32xbf16>
    %cst_43 = arith.constant dense<0.000000e+00> : vector<2x96xf32>
    %199 = tpu.matmul %198, %136, %cst_43 {dimension_numbers = #tpu.dot_dimension_numbers<[1], [0], [0], [1], [0, 0, 1, 1], [], []>} : vector<2x32xbf16>, vector<32x96xbf16>, vector<2x96xf32> -> vector<2x96xf32>
    %200 = vector.broadcast %137 : vector<1x96xf32> to vector<2x96xf32>
    %201 = arith.addf %199, %200 : vector<2x96xf32>
    %202 = vector.extract_strided_slice %197 {offsets = [0, 0], sizes = [2, 32], strides = [1, 1]} : vector<2x96xf32> to vector<2x32xf32>
    %203 = vector.extract_strided_slice %201 {offsets = [0, 0], sizes = [2, 32], strides = [1, 1]} : vector<2x96xf32> to vector<2x32xf32>
    %204 = arith.addf %202, %203 : vector<2x32xf32>
    %205 = arith.negf %204 : vector<2x32xf32>
    %206 = math.exp %205 : vector<2x32xf32>
    %cst_44 = arith.constant 1.000000e+00 : f32
    %207 = vector.broadcast %cst_44 : f32 to vector<2x32xf32>
    %208 = arith.addf %207, %206 : vector<2x32xf32>
    %209 = arith.divf %207, %208 : vector<2x32xf32>
    %210 = vector.extract_strided_slice %197 {offsets = [0, 32], sizes = [2, 32], strides = [1, 1]} : vector<2x96xf32> to vector<2x32xf32>
    %211 = vector.extract_strided_slice %201 {offsets = [0, 32], sizes = [2, 32], strides = [1, 1]} : vector<2x96xf32> to vector<2x32xf32>
    %212 = arith.addf %210, %211 : vector<2x32xf32>
    %213 = arith.negf %212 : vector<2x32xf32>
    %214 = math.exp %213 : vector<2x32xf32>
    %cst_45 = arith.constant 1.000000e+00 : f32
    %215 = vector.broadcast %cst_45 : f32 to vector<2x32xf32>
    %216 = arith.addf %215, %214 : vector<2x32xf32>
    %217 = arith.divf %215, %216 : vector<2x32xf32>
    %218 = vector.extract_strided_slice %197 {offsets = [0, 64], sizes = [2, 32], strides = [1, 1]} : vector<2x96xf32> to vector<2x32xf32>
    %219 = vector.extract_strided_slice %201 {offsets = [0, 64], sizes = [2, 32], strides = [1, 1]} : vector<2x96xf32> to vector<2x32xf32>
    %220 = arith.mulf %209, %219 : vector<2x32xf32>
    %221 = arith.addf %218, %220 : vector<2x32xf32>
    %222 = math.tanh %221 : vector<2x32xf32>
    %223 = arith.subf %196, %222 : vector<2x32xf32>
    %224 = arith.mulf %217, %223 : vector<2x32xf32>
    %225 = arith.addf %222, %224 : vector<2x32xf32>
    %226 = vector.extract_strided_slice %135 {offsets = [6, 0], sizes = [2, 96], strides = [1, 1]} : vector<8x96xf32> to vector<2x96xf32>
    %227 = arith.truncf %225 : vector<2x32xf32> to vector<2x32xbf16>
    %cst_46 = arith.constant dense<0.000000e+00> : vector<2x96xf32>
    %228 = tpu.matmul %227, %136, %cst_46 {dimension_numbers = #tpu.dot_dimension_numbers<[1], [0], [0], [1], [0, 0, 1, 1], [], []>} : vector<2x32xbf16>, vector<32x96xbf16>, vector<2x96xf32> -> vector<2x96xf32>
    %229 = vector.broadcast %137 : vector<1x96xf32> to vector<2x96xf32>
    %230 = arith.addf %228, %229 : vector<2x96xf32>
    %231 = vector.extract_strided_slice %226 {offsets = [0, 0], sizes = [2, 32], strides = [1, 1]} : vector<2x96xf32> to vector<2x32xf32>
    %232 = vector.extract_strided_slice %230 {offsets = [0, 0], sizes = [2, 32], strides = [1, 1]} : vector<2x96xf32> to vector<2x32xf32>
    %233 = arith.addf %231, %232 : vector<2x32xf32>
    %234 = arith.negf %233 : vector<2x32xf32>
    %235 = math.exp %234 : vector<2x32xf32>
    %cst_47 = arith.constant 1.000000e+00 : f32
    %236 = vector.broadcast %cst_47 : f32 to vector<2x32xf32>
    %237 = arith.addf %236, %235 : vector<2x32xf32>
    %238 = arith.divf %236, %237 : vector<2x32xf32>
    %239 = vector.extract_strided_slice %226 {offsets = [0, 32], sizes = [2, 32], strides = [1, 1]} : vector<2x96xf32> to vector<2x32xf32>
    %240 = vector.extract_strided_slice %230 {offsets = [0, 32], sizes = [2, 32], strides = [1, 1]} : vector<2x96xf32> to vector<2x32xf32>
    %241 = arith.addf %239, %240 : vector<2x32xf32>
    %242 = arith.negf %241 : vector<2x32xf32>
    %243 = math.exp %242 : vector<2x32xf32>
    %cst_48 = arith.constant 1.000000e+00 : f32
    %244 = vector.broadcast %cst_48 : f32 to vector<2x32xf32>
    %245 = arith.addf %244, %243 : vector<2x32xf32>
    %246 = arith.divf %244, %245 : vector<2x32xf32>
    %247 = vector.extract_strided_slice %226 {offsets = [0, 64], sizes = [2, 32], strides = [1, 1]} : vector<2x96xf32> to vector<2x32xf32>
    %248 = vector.extract_strided_slice %230 {offsets = [0, 64], sizes = [2, 32], strides = [1, 1]} : vector<2x96xf32> to vector<2x32xf32>
    %249 = arith.mulf %238, %248 : vector<2x32xf32>
    %250 = arith.addf %247, %249 : vector<2x32xf32>
    %251 = math.tanh %250 : vector<2x32xf32>
    %252 = arith.subf %225, %251 : vector<2x32xf32>
    %253 = arith.mulf %246, %252 : vector<2x32xf32>
    %254 = arith.addf %251, %253 : vector<2x32xf32>
    %c0_49 = arith.constant 0 : index
    %c0_50 = arith.constant 0 : index
    %255 = vector.load %arg16[%c0_49, %c0_50] : memref<2x32xf32, #tpu.memory_space<vmem>>, vector<2x32xf32>
    tpu.vector_store %arg16[%c0_49, %c0_50], %254 {strides = array<i32>} : memref<2x32xf32, #tpu.memory_space<vmem>>, vector<2x32xf32>,
    %256 = tpu.concatenate %167, %196, %225, %254 in 0 : vector<2x32xf32>, vector<2x32xf32>, vector<2x32xf32>, vector<2x32xf32> -> vector<8x32xf32>
    %257 = arith.truncf %256 : vector<8x32xf32> to vector<8x32xbf16>
    %c0_51 = arith.constant 0 : index
    %c0_52 = arith.constant 0 : index
    %258 = vector.load %arg22[%c0_51, %c0_52] : memref<32x96xbf16, #tpu.memory_space<vmem>>, vector<32x96xbf16>
    %cst_53 = arith.constant dense<0.000000e+00> : vector<8x96xf32>
    %259 = tpu.matmul %257, %258, %cst_53 {dimension_numbers = #tpu.dot_dimension_numbers<[1], [0], [0], [1], [0, 0, 1, 1], [], []>} : vector<8x32xbf16>, vector<32x96xbf16>, vector<8x96xf32> -> vector<8x96xf32>
    %c0_54 = arith.constant 0 : index
    %c0_55 = arith.constant 0 : index
    %260 = vector.load %arg12[%c0_54, %c0_55] : memref<1x96xf32, #tpu.memory_space<vmem>>, vector<1x96xf32>
    %261 = vector.broadcast %260 : vector<1x96xf32> to vector<8x96xf32>
    %262 = arith.addf %259, %261 : vector<8x96xf32>
    %c0_56 = arith.constant 0 : index
    %c0_57 = arith.constant 0 : index
    %263 = vector.load %arg23[%c0_56, %c0_57] : memref<32x96xbf16, #tpu.memory_space<vmem>>, vector<32x96xbf16>
    %c0_58 = arith.constant 0 : index
    %c0_59 = arith.constant 0 : index
    %264 = vector.load %arg13[%c0_58, %c0_59] : memref<1x96xf32, #tpu.memory_space<vmem>>, vector<1x96xf32>
    %c0_60 = arith.constant 0 : index
    %c0_61 = arith.constant 0 : index
    %265 = vector.load %arg17[%c0_60, %c0_61] : memref<2x32xf32, #tpu.memory_space<vmem>>, vector<2x32xf32>
    %266 = vector.extract_strided_slice %262 {offsets = [0, 0], sizes = [2, 96], strides = [1, 1]} : vector<8x96xf32> to vector<2x96xf32>
    %267 = arith.truncf %265 : vector<2x32xf32> to vector<2x32xbf16>
    %cst_62 = arith.constant dense<0.000000e+00> : vector<2x96xf32>
    %268 = tpu.matmul %267, %263, %cst_62 {dimension_numbers = #tpu.dot_dimension_numbers<[1], [0], [0], [1], [0, 0, 1, 1], [], []>} : vector<2x32xbf16>, vector<32x96xbf16>, vector<2x96xf32> -> vector<2x96xf32>
    %269 = vector.broadcast %264 : vector<1x96xf32> to vector<2x96xf32>
    %270 = arith.addf %268, %269 : vector<2x96xf32>
    %271 = vector.extract_strided_slice %266 {offsets = [0, 0], sizes = [2, 32], strides = [1, 1]} : vector<2x96xf32> to vector<2x32xf32>
    %272 = vector.extract_strided_slice %270 {offsets = [0, 0], sizes = [2, 32], strides = [1, 1]} : vector<2x96xf32> to vector<2x32xf32>
    %273 = arith.addf %271, %272 : vector<2x32xf32>
    %274 = arith.negf %273 : vector<2x32xf32>
    %275 = math.exp %274 : vector<2x32xf32>
    %cst_63 = arith.constant 1.000000e+00 : f32
    %276 = vector.broadcast %cst_63 : f32 to vector<2x32xf32>
    %277 = arith.addf %276, %275 : vector<2x32xf32>
    %278 = arith.divf %276, %277 : vector<2x32xf32>
    %279 = vector.extract_strided_slice %266 {offsets = [0, 32], sizes = [2, 32], strides = [1, 1]} : vector<2x96xf32> to vector<2x32xf32>
    %280 = vector.extract_strided_slice %270 {offsets = [0, 32], sizes = [2, 32], strides = [1, 1]} : vector<2x96xf32> to vector<2x32xf32>
    %281 = arith.addf %279, %280 : vector<2x32xf32>
    %282 = arith.negf %281 : vector<2x32xf32>
    %283 = math.exp %282 : vector<2x32xf32>
    %cst_64 = arith.constant 1.000000e+00 : f32
    %284 = vector.broadcast %cst_64 : f32 to vector<2x32xf32>
    %285 = arith.addf %284, %283 : vector<2x32xf32>
    %286 = arith.divf %284, %285 : vector<2x32xf32>
    %287 = vector.extract_strided_slice %266 {offsets = [0, 64], sizes = [2, 32], strides = [1, 1]} : vector<2x96xf32> to vector<2x32xf32>
    %288 = vector.extract_strided_slice %270 {offsets = [0, 64], sizes = [2, 32], strides = [1, 1]} : vector<2x96xf32> to vector<2x32xf32>
    %289 = arith.mulf %278, %288 : vector<2x32xf32>
    %290 = arith.addf %287, %289 : vector<2x32xf32>
    %291 = math.tanh %290 : vector<2x32xf32>
    %292 = arith.subf %265, %291 : vector<2x32xf32>
    %293 = arith.mulf %286, %292 : vector<2x32xf32>
    %294 = arith.addf %291, %293 : vector<2x32xf32>
    %295 = vector.extract_strided_slice %262 {offsets = [2, 0], sizes = [2, 96], strides = [1, 1]} : vector<8x96xf32> to vector<2x96xf32>
    %296 = arith.truncf %294 : vector<2x32xf32> to vector<2x32xbf16>
    %cst_65 = arith.constant dense<0.000000e+00> : vector<2x96xf32>
    %297 = tpu.matmul %296, %263, %cst_65 {dimension_numbers = #tpu.dot_dimension_numbers<[1], [0], [0], [1], [0, 0, 1, 1], [], []>} : vector<2x32xbf16>, vector<32x96xbf16>, vector<2x96xf32> -> vector<2x96xf32>
    %298 = vector.broadcast %264 : vector<1x96xf32> to vector<2x96xf32>
    %299 = arith.addf %297, %298 : vector<2x96xf32>
    %300 = vector.extract_strided_slice %295 {offsets = [0, 0], sizes = [2, 32], strides = [1, 1]} : vector<2x96xf32> to vector<2x32xf32>
    %301 = vector.extract_strided_slice %299 {offsets = [0, 0], sizes = [2, 32], strides = [1, 1]} : vector<2x96xf32> to vector<2x32xf32>
    %302 = arith.addf %300, %301 : vector<2x32xf32>
    %303 = arith.negf %302 : vector<2x32xf32>
    %304 = math.exp %303 : vector<2x32xf32>
    %cst_66 = arith.constant 1.000000e+00 : f32
    %305 = vector.broadcast %cst_66 : f32 to vector<2x32xf32>
    %306 = arith.addf %305, %304 : vector<2x32xf32>
    %307 = arith.divf %305, %306 : vector<2x32xf32>
    %308 = vector.extract_strided_slice %295 {offsets = [0, 32], sizes = [2, 32], strides = [1, 1]} : vector<2x96xf32> to vector<2x32xf32>
    %309 = vector.extract_strided_slice %299 {offsets = [0, 32], sizes = [2, 32], strides = [1, 1]} : vector<2x96xf32> to vector<2x32xf32>
    %310 = arith.addf %308, %309 : vector<2x32xf32>
    %311 = arith.negf %310 : vector<2x32xf32>
    %312 = math.exp %311 : vector<2x32xf32>
    %cst_67 = arith.constant 1.000000e+00 : f32
    %313 = vector.broadcast %cst_67 : f32 to vector<2x32xf32>
    %314 = arith.addf %313, %312 : vector<2x32xf32>
    %315 = arith.divf %313, %314 : vector<2x32xf32>
    %316 = vector.extract_strided_slice %295 {offsets = [0, 64], sizes = [2, 32], strides = [1, 1]} : vector<2x96xf32> to vector<2x32xf32>
    %317 = vector.extract_strided_slice %299 {offsets = [0, 64], sizes = [2, 32], strides = [1, 1]} : vector<2x96xf32> to vector<2x32xf32>
    %318 = arith.mulf %307, %317 : vector<2x32xf32>
    %319 = arith.addf %316, %318 : vector<2x32xf32>
    %320 = math.tanh %319 : vector<2x32xf32>
    %321 = arith.subf %294, %320 : vector<2x32xf32>
    %322 = arith.mulf %315, %321 : vector<2x32xf32>
    %323 = arith.addf %320, %322 : vector<2x32xf32>
    %324 = vector.extract_strided_slice %262 {offsets = [4, 0], sizes = [2, 96], strides = [1, 1]} : vector<8x96xf32> to vector<2x96xf32>
    %325 = arith.truncf %323 : vector<2x32xf32> to vector<2x32xbf16>
    %cst_68 = arith.constant dense<0.000000e+00> : vector<2x96xf32>
    %326 = tpu.matmul %325, %263, %cst_68 {dimension_numbers = #tpu.dot_dimension_numbers<[1], [0], [0], [1], [0, 0, 1, 1], [], []>} : vector<2x32xbf16>, vector<32x96xbf16>, vector<2x96xf32> -> vector<2x96xf32>
    %327 = vector.broadcast %264 : vector<1x96xf32> to vector<2x96xf32>
    %328 = arith.addf %326, %327 : vector<2x96xf32>
    %329 = vector.extract_strided_slice %324 {offsets = [0, 0], sizes = [2, 32], strides = [1, 1]} : vector<2x96xf32> to vector<2x32xf32>
    %330 = vector.extract_strided_slice %328 {offsets = [0, 0], sizes = [2, 32], strides = [1, 1]} : vector<2x96xf32> to vector<2x32xf32>
    %331 = arith.addf %329, %330 : vector<2x32xf32>
    %332 = arith.negf %331 : vector<2x32xf32>
    %333 = math.exp %332 : vector<2x32xf32>
    %cst_69 = arith.constant 1.000000e+00 : f32
    %334 = vector.broadcast %cst_69 : f32 to vector<2x32xf32>
    %335 = arith.addf %334, %333 : vector<2x32xf32>
    %336 = arith.divf %334, %335 : vector<2x32xf32>
    %337 = vector.extract_strided_slice %324 {offsets = [0, 32], sizes = [2, 32], strides = [1, 1]} : vector<2x96xf32> to vector<2x32xf32>
    %338 = vector.extract_strided_slice %328 {offsets = [0, 32], sizes = [2, 32], strides = [1, 1]} : vector<2x96xf32> to vector<2x32xf32>
    %339 = arith.addf %337, %338 : vector<2x32xf32>
    %340 = arith.negf %339 : vector<2x32xf32>
    %341 = math.exp %340 : vector<2x32xf32>
    %cst_70 = arith.constant 1.000000e+00 : f32
    %342 = vector.broadcast %cst_70 : f32 to vector<2x32xf32>
    %343 = arith.addf %342, %341 : vector<2x32xf32>
    %344 = arith.divf %342, %343 : vector<2x32xf32>
    %345 = vector.extract_strided_slice %324 {offsets = [0, 64], sizes = [2, 32], strides = [1, 1]} : vector<2x96xf32> to vector<2x32xf32>
    %346 = vector.extract_strided_slice %328 {offsets = [0, 64], sizes = [2, 32], strides = [1, 1]} : vector<2x96xf32> to vector<2x32xf32>
    %347 = arith.mulf %336, %346 : vector<2x32xf32>
    %348 = arith.addf %345, %347 : vector<2x32xf32>
    %349 = math.tanh %348 : vector<2x32xf32>
    %350 = arith.subf %323, %349 : vector<2x32xf32>
    %351 = arith.mulf %344, %350 : vector<2x32xf32>
    %352 = arith.addf %349, %351 : vector<2x32xf32>
    %353 = vector.extract_strided_slice %262 {offsets = [6, 0], sizes = [2, 96], strides = [1, 1]} : vector<8x96xf32> to vector<2x96xf32>
    %354 = arith.truncf %352 : vector<2x32xf32> to vector<2x32xbf16>
    %cst_71 = arith.constant dense<0.000000e+00> : vector<2x96xf32>
    %355 = tpu.matmul %354, %263, %cst_71 {dimension_numbers = #tpu.dot_dimension_numbers<[1], [0], [0], [1], [0, 0, 1, 1], [], []>} : vector<2x32xbf16>, vector<32x96xbf16>, vector<2x96xf32> -> vector<2x96xf32>
    %356 = vector.broadcast %264 : vector<1x96xf32> to vector<2x96xf32>
    %357 = arith.addf %355, %356 : vector<2x96xf32>
    %358 = vector.extract_strided_slice %353 {offsets = [0, 0], sizes = [2, 32], strides = [1, 1]} : vector<2x96xf32> to vector<2x32xf32>
    %359 = vector.extract_strided_slice %357 {offsets = [0, 0], sizes = [2, 32], strides = [1, 1]} : vector<2x96xf32> to vector<2x32xf32>
    %360 = arith.addf %358, %359 : vector<2x32xf32>
    %361 = arith.negf %360 : vector<2x32xf32>
    %362 = math.exp %361 : vector<2x32xf32>
    %cst_72 = arith.constant 1.000000e+00 : f32
    %363 = vector.broadcast %cst_72 : f32 to vector<2x32xf32>
    %364 = arith.addf %363, %362 : vector<2x32xf32>
    %365 = arith.divf %363, %364 : vector<2x32xf32>
    %366 = vector.extract_strided_slice %353 {offsets = [0, 32], sizes = [2, 32], strides = [1, 1]} : vector<2x96xf32> to vector<2x32xf32>
    %367 = vector.extract_strided_slice %357 {offsets = [0, 32], sizes = [2, 32], strides = [1, 1]} : vector<2x96xf32> to vector<2x32xf32>
    %368 = arith.addf %366, %367 : vector<2x32xf32>
    %369 = arith.negf %368 : vector<2x32xf32>
    %370 = math.exp %369 : vector<2x32xf32>
    %cst_73 = arith.constant 1.000000e+00 : f32
    %371 = vector.broadcast %cst_73 : f32 to vector<2x32xf32>
    %372 = arith.addf %371, %370 : vector<2x32xf32>
    %373 = arith.divf %371, %372 : vector<2x32xf32>
    %374 = vector.extract_strided_slice %353 {offsets = [0, 64], sizes = [2, 32], strides = [1, 1]} : vector<2x96xf32> to vector<2x32xf32>
    %375 = vector.extract_strided_slice %357 {offsets = [0, 64], sizes = [2, 32], strides = [1, 1]} : vector<2x96xf32> to vector<2x32xf32>
    %376 = arith.mulf %365, %375 : vector<2x32xf32>
    %377 = arith.addf %374, %376 : vector<2x32xf32>
    %378 = math.tanh %377 : vector<2x32xf32>
    %379 = arith.subf %352, %378 : vector<2x32xf32>
    %380 = arith.mulf %373, %379 : vector<2x32xf32>
    %381 = arith.addf %378, %380 : vector<2x32xf32>
    %c0_74 = arith.constant 0 : index
    %c0_75 = arith.constant 0 : index
    %382 = vector.load %arg17[%c0_74, %c0_75] : memref<2x32xf32, #tpu.memory_space<vmem>>, vector<2x32xf32>
    tpu.vector_store %arg17[%c0_74, %c0_75], %381 {strides = array<i32>} : memref<2x32xf32, #tpu.memory_space<vmem>>, vector<2x32xf32>,
    %383 = tpu.concatenate %294, %323, %352, %381 in 0 : vector<2x32xf32>, vector<2x32xf32>, vector<2x32xf32>, vector<2x32xf32> -> vector<8x32xf32>
    %384 = arith.truncf %383 : vector<8x32xf32> to vector<8x32xbf16>
    %c0_76 = arith.constant 0 : index
    %c0_77 = arith.constant 0 : index
    %385 = vector.load %arg14[%c0_76, %c0_77] : memref<8x32xbf16, #tpu.memory_space<vmem>>, vector<8x32xbf16>
    tpu.vector_store %arg14[%c0_76, %c0_77], %384 {strides = array<i32>} : memref<8x32xbf16, #tpu.memory_space<vmem>>, vector<8x32xbf16>,
    return
  }
  func.func @transform_0(%arg0: i32) -> (i32, i32) {
    %c0_i32 = arith.constant 0 : i32
    %c0_i32_0 = arith.constant 0 : i32
    return %arg0, %c0_i32 : i32, i32
  }
  func.func @transform_7(%arg0: i32) -> (i32, i32) {
    %c0_i32 = arith.constant 0 : i32
    %c0_i32_0 = arith.constant 0 : i32
    %c0_i32_1 = arith.constant 0 : i32
    return %c0_i32, %c0_i32_0 : i32, i32
  }
  func.func @transform_8(%arg0: i32) -> (i32, i32) {
    %c0_i32 = arith.constant 0 : i32
    %c0_i32_0 = arith.constant 0 : i32
    %c0_i32_1 = arith.constant 0 : i32
    return %c0_i32, %c0_i32_0 : i32, i32
  }
  func.func @transform_9(%arg0: i32) -> (i32, i32) {
    %c0_i32 = arith.constant 0 : i32
    %c0_i32_0 = arith.constant 0 : i32
    %c0_i32_1 = arith.constant 0 : i32
    return %c0_i32, %c0_i32_0 : i32, i32
  }
  func.func @transform_10(%arg0: i32) -> (i32, i32) {
    %c0_i32 = arith.constant 0 : i32
    %c0_i32_0 = arith.constant 0 : i32
    %c0_i32_1 = arith.constant 0 : i32
    return %c0_i32, %c0_i32_0 : i32, i32
  }
  func.func @transform_11(%arg0: i32) -> (i32, i32) {
    %c0_i32 = arith.constant 0 : i32
    %c0_i32_0 = arith.constant 0 : i32
    %c0_i32_1 = arith.constant 0 : i32
    return %c0_i32, %c0_i32_0 : i32, i32
  }
  func.func @transform_12(%arg0: i32) -> (i32, i32) {
    %c0_i32 = arith.constant 0 : i32
    %c0_i32_0 = arith.constant 0 : i32
    %c0_i32_1 = arith.constant 0 : i32
    return %c0_i32, %c0_i32_0 : i32, i32
  }
  func.func @transform_13(%arg0: i32) -> (i32, i32) {
    %c0_i32 = arith.constant 0 : i32
    %c0_i32_0 = arith.constant 0 : i32
    return %arg0, %c0_i32 : i32, i32
  }
}

</mosaic_0001>

<bundles_post_ra>
// kernel: tpu_custom_call.1
= control target key start
LH: loop header
LB: loop body
LE: loop exit
PB: predicated region body
PF: predicated region fallthrough
CT: control target
= control target key end

     0   :  { %s2971_s0 = inlined_call_operand.hbm [shape: bf16[16,32], index: 0, kind: input, shape index: {}]   ;;  %s2972_s1 = inlined_call_operand.hbm [shape: bf16[32,96], index: 1, kind: input, shape index: {}]   ;;  %s2973_s2 = inlined_call_operand.hbm [shape: bf16[32,96], index: 2, kind: input, shape index: {}]   ;;  %s2974_s3 = inlined_call_operand.hbm [shape: bf16[32,96], index: 3, kind: input, shape index: {}]   ;;  %s2975_s4 = inlined_call_operand.hbm [shape: bf16[32,96], index: 4, kind: input, shape index: {}]   ;;  %s2976_s5 = inlined_call_operand.hbm [shape: bf16[32,96], index: 5, kind: input, shape index: {}]   ;;  %s2977_s6 = inlined_call_operand.hbm [shape: bf16[32,96], index: 6, kind: input, shape index: {}]   ;;  %s2978_s7 = inlined_call_operand.vmem [shape: f32[1,96], index: 7, kind: input, shape index: {}]   ;;  %s2979_s8 = inlined_call_operand.vmem [shape: f32[1,96], index: 8, kind: input, shape index: {}]   ;;  %s2980_s9 = inlined_call_operand.vmem [shape: f32[1,96], index: 9, kind: input, shape index: {}]   ;;  %s2981_s10 = inlined_call_operand.vmem [shape: f32[1,96], index: 10, kind: input, shape index: {}]   ;;  %s2982_s11 = inlined_call_operand.vmem [shape: f32[1,96], index: 11, kind: input, shape index: {}]   ;;  %s2983_s12 = inlined_call_operand.vmem [shape: f32[1,96], index: 12, kind: input, shape index: {}]   ;;  %s2984_s13 = inlined_call_operand.hbm [shape: bf16[16,32], index: 13, kind: output, shape index: {}]  }
   0x1   :  { %2993 = sst [smem:[#allocation43_spill]] %s2971_s0 }
   0x2   :  { %2994 = sst [smem:[#allocation44_spill]] %s2984_s13 }
   0x3   :  { %18 = vsyncpa [#allocation13], 0 }
   0x4   :  { %20 = vsyncpa [#allocation13 + $0x1], 0 }
   0x5   :  { %21 = vsyncpa [#allocation14], 0 }
   0x6   :  { %23 = vsyncpa [#allocation14 + $0x1], 0  ;;  %s2494_s25 = smov 0   ;;  %s2496_s26 = smov 0  }
   0x7   :  { %s2498_s27 = smov 0   ;;  %s2500_s28 = smov 0  }
   0x8 LB: > { %2995 = sst [smem:[#allocation38_spill]] %s2396_s25  ;;  %s2515_s29 = sadd.s32 4294967295, %s2408_s28   ;;  %s2408_s28 = sphi %s2500_s28, %s3015_s28   ;;  %s2404_s27 = sphi %s2498_s27, %s3017_s27   ;;  %s2400_s26 = sphi %s2496_s26, %s3019_s26   ;;  %s2396_s25 = sphi %s2494_s25, %s3018_s25  }
   0x9   : > { %2996 = sst [smem:[#allocation39_spill]] %s2404_s27  ;;  %s1811_s30 = sadd.s32 4294967294, %s2408_s28  }
   0xa   : > { %s2519_s14 = sadd.s32 1, %s2408_s28   ;;  %s36_s15 = sadd.s32 1, %s2404_s27 }
   0xb   : > { %2997 = sst [smem:[#allocation40_spill]] %s2519_s14  ;;  %s33_s16 = ssub.s32 %s2408_s28, %s2519_s14 }
   0xc   : > { %p43_p0 = scmp.ne.s32.totalorder %s2404_s27, %s2400_s26  ;;  %p34_p1 = scmp.eq.s32.totalorder %s33_s16, 0 }
   0xd   : > { %p44_p2 = scmp.eq.s32.totalorder %s2408_s28, 0  ;;  %p49_p3 = scmp.ne.s32.totalorder %s2400_s26, %s2396_s25 }
   0xe   : > { %p50_p4 = scmp.eq.s32.totalorder %s2515_s29, 0  ;;  %p199_p7 = scmp.eq.s32.totalorder %s2515_s29, 1 }
   0xf   : > { %s2531_s17 = scalar_select %p34_p1, %s2404_s27, %s36_s15  }
  0x10   : > { %p2533_p5 = por %p44_p2, %p43_p0  ;;  %p2537_p6 = por %p50_p4, %p49_p3 }
  0x11   : > { %2998 = sst [smem:[#allocation41_spill]] %s2531_s17  ;;  %p205_p8 = scmp.eq.s32.totalorder %s1811_s30, 1 }
  0x12   : > { %s3000_s19 = scalar_select %p2537_p6, 1, 0 }
  0x13   : > { %p2054_p10 = scmp.lt.s32.totalorder %s2408_s28, 2  ;;  %p2544_p11 = por %p199_p7, %p43_p0 }
  0x14   : > { %p2548_p12 = por %p205_p8, %p49_p3  ;;  %s243_s22 = sand.u32 1, %s2404_s27  }
  0x15   : > { %s3001_s20 = scalar_select %p2544_p11, 1, 0 }
  0x16   : > { %s3002_s21 = scalar_select %p2548_p12, 1, 0 }
  0x17   : > { %s1815_s23 = sshll.u32 %s2408_s28, 6  ;;  %s1814_s24 = sshll.u32 %s243_s22, 2 }
  0x18   : > { %3003 = sst [smem:[#allocation42_spill]] %s3002_s21  ;;  %s247_s30 = scalar_lea.vmem [#allocation12], %s1814_s24 }
  0x19   : > { %s3004_s0 = sld [smem:[#allocation43_spill]]  ;;  %s254_s14 = sshll.u32 %s247_s30, 4  ;;  %s2565_s14 = int_to_ptr.vmem [resolvable:$true] %s254_s14 }
  0x1a   : > { %p2561_p13 = pnand %p2054_p10, %p2533_p5  ;;  %s244_s27 = scalar_lea.sflag [#allocation13], %s243_s22 }
  0x1c   : > { %p2186_p3 = pneg %p2561_p13 }
  0x1f   : > { %s2557_s17 = scalar_lea.hbm %s3004_s0, %s1815_s23  ;;  %s2189_s18 = scalar_lea.hbm %s3004_s0, 128 }
  0x20   : > { %s2184_s21 = scalar_lea.hbm %s2557_s17, 64  ;;  %p2190_p5 = scmp.lt.s32.totalorder %s2557_s17, %s3004_s0 }
  0x21   : > { %p2185_p2 = scmp.ne.s32.totalorder %s2557_s17, %s2184_s21  ;;  %p2191_p8 = scmp.lt.s32.totalorder %s2189_s18, %s2184_s21 }
  0x23   : > { %p2187_p4 = pnand %p2186_p3, %p2185_p2  ;;  %p2192_p10 = por %p2191_p8, %p2190_p5 }
  0x25   : > { %p2188_p7 = pneg %p2187_p4 }
  0x27   : > { %p2193_p9 = pnand %p2192_p10, %p2188_p7 }
  0x29   : > { %2196 = shalt.err (!%p2193_p9)
}
  0x2a   : > { %s2197_s22 = scalar_lea.vmem %s2565_s14, 64  ;;  %s2410_s30 = smov [#allocation12]  }
  0x2b   : > { %p2198_p0 = scmp.ne.s32.totalorder %s2565_s14, %s2197_s22  ;;  %s2202_s13 = sshll.u32 %s2410_s30, 4  ;;  %s2203_s13 = int_to_ptr.vmem [resolvable:$false] %s2202_s13 }
  0x2c   : > { %s2204_s23 = scalar_lea.vmem %s2203_s13, 128  ;;  %p2205_p4 = scmp.lt.s32.totalorder %s2565_s14, %s2203_s13 }
  0x2d   : > { %p2200_p1 = pnand %p2198_p0, %p2186_p3  ;;  %p2206_p12 = scmp.lt.s32.totalorder %s2204_s23, %s2197_s22 }
  0x2f   : > { %p2201_p2 = pneg %p2200_p1  ;;  %p2207_p11 = por %p2206_p12, %p2205_p4 }
  0x31   : > { %p2208_p6 = pnand %p2207_p11, %p2201_p2 }
  0x33   : > { %2211 = shalt.err (!%p2208_p6)
}
  0x34   : > { %2049 = dma.hbm_to_vmem [thread:$0]  (!%p2561_p13), %s2557_s17, 64, %s2565_s14, %s244_s27  }
  0x35   : > { %p3006_p9 = scmp.lt.s32.totalorder %s2408_s28, 3  ;;  %p3007_p7 = scmp.ge.s32.totalorder %s2408_s28, 1 }
  0x37   : > { %p260_p0 = pnand %p3007_p7, %p3006_p9 }
  0x38   : > { %s2592_s21 = sand.u32 (!%p260_p0), 1, %s2400_s26   ;;  %p3008_p6 = scmp.ne.s32.totalorder (!%p260_p0), %s3000_s19, 0 }
  0x39   : > { %263 = sbr.rel (%p260_p0) target bundleno = 9965 (0x26ed), region = 48  ;;  %s1817_s13 = sshll.u32 (!%p260_p0), %s2592_s21, 2 }
  0x3a   : > { %s266_s24 = scalar_lea.sflag (!%p260_p0), [#allocation13], %s2592_s21  ;;  %s2596_s18 = scalar_lea.vmem (!%p260_p0), [#allocation12], %s1817_s13 }
  0x3e   : > { %2375 = dma.done.wait (%p3008_p6), %s266_s24, 64  }
  0x3f   : > { %2377 = vsyncadd (%p3008_p6), %s266_s24, 4294967232  ;;  %s2602_s25 = scalar_lea.vmem [#allocation15], %s1817_s13  ;;  %p1819_p11 = scmp.ne.s32.totalorder %s2515_s29, 0 }
  0x40   : > { %s2411_s27 = smov (!%p1819_p11), [#allocation5]   ;;  %s2412_s17 = smov (!%p1819_p11), [#allocation6]  }
  0x41   : > { %304 = sbr.rel (%p1819_p11) target bundleno = 137 (0x89), region = 56  ;;  %s316_s14 = sshll.u32 (!%p1819_p11), %s2411_s27, 4  ;;  %s317_s14 = int_to_ptr.vmem [resolvable:$true] %s316_s14 }
  0x42   : > { %s328_s15 = sshll.u32 (!%p1819_p11), %s2412_s17, 4  ;;  %s2220_s16 = scalar_lea.vmem (!%p1819_p11), %s317_s14, 256  ;;  %s329_s15 = int_to_ptr.vmem [resolvable:$true] %s328_s15 }
  0x43   : > { %p2221_p12 = scmp.ne.s32.totalorder (!%p1819_p11), %s317_s14, %s2220_s16  ;;  %p2225_p13 = scmp.lt.s32.totalorder (!%p1819_p11), %s317_s14, %s317_s14 }
  0x44   : > { %p2226_p1 = scmp.lt.s32.totalorder (!%p1819_p11), %s2220_s16, %s2220_s16 }
  0x46   : > { %vm305_vm0 = vcmask 254976   ;;  %v2413_v0 = vmov 0.0   ;;  %p2227_p3 = por %p2226_p1, %p2225_p13 }
  0x47   : > { %306 = vst.msk [vmem:[#allocation2] sm:$0x3] %vm305_vm0, %v2413_v0  ;;  %307 = vst.msk [vmem:[#allocation3] sm:$0x3] %vm305_vm0, %v2413_v0 }
  0x48   : > { %308 = vst.msk [vmem:[#allocation4] sm:$0x3] %vm305_vm0, %v2413_v0  ;;  %p2228_p5 = pnand %p2227_p3, %p2221_p12 }
  0x4a   : > { %2231 = shalt.err (!%p2228_p5)  }
  0x4b   : > { %319 = dma.hbm_to_vmem [thread:$0]  %s2972_s1, 256, %s317_s14, [#allocation11] }
  0x4c   : > { %s2240_s30 = scalar_lea.vmem %s329_s15, 256  ;;  %p2245_p10 = scmp.lt.s32.totalorder %s329_s15, %s329_s15 }
  0x4d   : > { %p2241_p8 = scmp.ne.s32.totalorder %s329_s15, %s2240_s30  ;;  %p2246_p2 = scmp.lt.s32.totalorder %s2240_s30, %s2240_s30 }
  0x4f   : > { %p2247_p4 = por %p2246_p2, %p2245_p10 }
  0x51   : > { %p2248_p9 = pnand %p2247_p4, %p2241_p8 }
  0x53   : > { %2251 = shalt.err (!%p2248_p9)  }
  0x54   : > { %331 = dma.hbm_to_vmem [thread:$0]  %s2973_s2, 256, %s329_s15, [#allocation11 + $0x1] }
  0x55   : > { %s2414_s24 = smov [#allocation7]   ;;  %s2415_s17 = smov [#allocation8]  }
  0x56   : > { %s340_s27 = sshll.u32 %s2414_s24, 4  ;;  %s352_s16 = sshll.u32 %s2415_s17, 4  ;;  %s341_s27 = int_to_ptr.vmem [resolvable:$true] %s340_s27  ;;  %s353_s16 = int_to_ptr.vmem [resolvable:$true] %s352_s16 }
  0x57   : > { %s2260_s0 = scalar_lea.vmem %s341_s27, 256  ;;  %p2265_p0 = scmp.lt.s32.totalorder %s341_s27, %s341_s27 }
  0x58   : > { %p2261_p7 = scmp.ne.s32.totalorder %s341_s27, %s2260_s0  ;;  %p2266_p6 = scmp.lt.s32.totalorder %s2260_s0, %s2260_s0 }
  0x5a   : > { %p2267_p11 = por %p2266_p6, %p2265_p0 }
  0x5c   : > { %p2268_p12 = pnand %p2267_p11, %p2261_p7 }
  0x5e   : > { %2271 = shalt.err (!%p2268_p12)  }
  0x5f   : > { %343 = dma.hbm_to_vmem [thread:$0]  %s2974_s3, 256, %s341_s27, [#allocation11 + $0x2] }
  0x60   : > { %s2280_s22 = scalar_lea.vmem %s353_s16, 256  ;;  %p2285_p1 = scmp.lt.s32.totalorder %s353_s16, %s353_s16 }
  0x61   : > { %p2281_p13 = scmp.ne.s32.totalorder %s353_s16, %s2280_s22  ;;  %p2286_p3 = scmp.lt.s32.totalorder %s2280_s22, %s2280_s22 }
  0x63   : > { %p2287_p5 = por %p2286_p3, %p2285_p1 }
  0x65   : > { %p2288_p8 = pnand %p2287_p5, %p2281_p13 }
  0x67   : > { %2291 = shalt.err (!%p2288_p8)  }
  0x68   : > { %355 = dma.hbm_to_vmem [thread:$0]  %s2975_s4, 256, %s353_s16, [#allocation11 + $0x3] }
  0x69   : > { %s2416_s23 = smov [#allocation9]   ;;  %s2417_s13 = smov [#allocation10]  }
  0x6a   : > { %s364_s0 = sshll.u32 %s2416_s23, 4  ;;  %s376_s24 = sshll.u32 %s2417_s13, 4  ;;  %s365_s0 = int_to_ptr.vmem [resolvable:$true] %s364_s0  ;;  %s377_s24 = int_to_ptr.vmem [resolvable:$true] %s376_s24 }
  0x6b   : > { %s2300_s17 = scalar_lea.vmem %s365_s0, 256  ;;  %p2305_p2 = scmp.lt.s32.totalorder %s365_s0, %s365_s0 }
  0x6c   : > { %p2301_p10 = scmp.ne.s32.totalorder %s365_s0, %s2300_s17  ;;  %p2306_p4 = scmp.lt.s32.totalorder %s2300_s17, %s2300_s17 }
  0x6e   : > { %p2307_p9 = por %p2306_p4, %p2305_p2 }
  0x70   : > { %p2308_p7 = pnand %p2307_p9, %p2301_p10 }
  0x72   : > { %2311 = shalt.err (!%p2308_p7)  }
  0x73   : > { %367 = dma.hbm_to_vmem [thread:$0]  %s2976_s5, 256, %s365_s0, [#allocation11 + $0x4] }
  0x74   : > { %s2320_s19 = scalar_lea.vmem %s377_s24, 256  ;;  %p2325_p6 = scmp.lt.s32.totalorder %s377_s24, %s377_s24 }
  0x75   : > { %p2321_p0 = scmp.ne.s32.totalorder %s377_s24, %s2320_s19  ;;  %p2326_p11 = scmp.lt.s32.totalorder %s2320_s19, %s2320_s19 }
  0x77   : > { %p2327_p12 = por %p2326_p11, %p2325_p6 }
  0x79   : > { %p2328_p13 = pnand %p2327_p12, %p2321_p0 }
  0x7b   : > { %2331 = shalt.err (!%p2328_p13)  }
  0x7c   : > { %379 = dma.hbm_to_vmem [thread:$0]  %s2977_s6, 256, %s377_s24, [#allocation11 + $0x5] }
  0x7d   : > { %2378 = dma.done.wait [#allocation11], 256 }
  0x7e   : > { %2379 = vsyncadd [#allocation11], 4294967040 }
  0x7f   : > { %2380 = dma.done.wait [#allocation11 + $0x1], 256 }
  0x80   : > { %2381 = vsyncadd [#allocation11 + $0x1], 4294967040 }
  0x81   : > { %2382 = dma.done.wait [#allocation11 + $0x2], 256 }
  0x82   : > { %2383 = vsyncadd [#allocation11 + $0x2], 4294967040 }
  0x83   : > { %2384 = dma.done.wait [#allocation11 + $0x3], 256 }
  0x84   : > { %2385 = vsyncadd [#allocation11 + $0x3], 4294967040 }
  0x85   : > { %2386 = dma.done.wait [#allocation11 + $0x4], 256 }
  0x86   : > { %2387 = vsyncadd [#allocation11 + $0x4], 4294967040 }
  0x87   : > { %2388 = dma.done.wait [#allocation11 + $0x5], 256 }
  0x88   : > { %2389 = vsyncadd [#allocation11 + $0x5], 4294967040 }
  0x89 PF: > { %v2100_v1 = vld [vmem:[#allocation5 + $0x8] sm:$0xff]   ;;  %v2418_v2 = vmov 0.0   ;;  %v2625_v3 = vld [vmem:[#allocation6 + $0x8] sm:$0xff]   ;;  %v2102_v4 = vld [vmem:[#allocation5] sm:$0xff]   ;;  %vm2419_vm1 = vmmov 0   ;;  %vm418_vm2 = vcmask 261120  }
  0x8a   : > { %1922 = vmatprep.subr.bf16.mxu0 %v2418_v2  ;;  %1930 = vmatprep.subr.bf16.mxu1 %v2418_v2  ;;  %v2631_v5 = vld [vmem:[#allocation6] sm:$0xff]   ;;  %v394_v6 = vld [vmem:[%s2596_s18] sm:$0xf]  ;;  %v467_v7 = vld [vmem:[#allocation2] sm:$0x3]  ;;  %s2420_s30 = smov 64  }
  0x8b   : > { %1923 = vmatpush3.bf16.msra.mxu0 %v2100_v1  ;;  %1926 = vmatprep.mubr.msk.bf16.mxu0 %vm2419_vm1, %v2418_v2  ;;  %v468_v8 = vpack.c.bf16 %v467_v7, %v467_v7  ;;  %v2657_v9 = vld [vmem:[%s2979_s8] ss:$0 sm:$0xff]  ;;  %s2421_s13 = smov 32   ;;  %s2422_s24 = smov 96   ;;  %vm817_vm3 = vcmask 1041408   ;;  %vm819_vm4 = vcmask 1043456  }
  0x8c   : > { %1931 = vmatpush3.bf16.msra.mxu1 %v2625_v3  ;;  %1924 = vmatprep.subr.bf16.mxu0 %v2418_v2  ;;  %v1820_v19 = vld [vmem:[%s2978_s7] ss:$0 sm:$0xff]  ;;  %vm821_vm5 = vcmask 1045504   ;;  %vm815_vm6 = vcmask 261126   ;;  %s1867_s23 = sshll.u32 %s2515_s29, 6  ;;  %s1700_s0 = sshll.u32 %s2602_s25, 4  ;;  %s1701_s0 = int_to_ptr.vmem [resolvable:$true] %s1700_s0 }
  0x8d   : > { %1932 = vmatprep.subr.bf16.mxu1 %v2418_v2  ;;  %1934 = vmatprep.mubr.msk.bf16.mxu1 %vm2419_vm1, %v2418_v2  ;;  %vm1684_vm7 = vcmask 257024   ;;  %s3009_s17 = sld [smem:[#allocation44_spill]]  ;;  %s1687_s14 = scalar_lea.sflag [#allocation14], %s2592_s21 }
  0x8e   : > { %s2332_s19 = scalar_lea.vmem %s1701_s0, 64  ;;  %p3010_p3 = scmp.ne.s32.totalorder %s3001_s20, 0 }
  0x8f   : > { %1925 = vmatpush3.bf16.msra.mxu0 %v2102_v4  ;;  %p2333_p1 = scmp.ne.s32.totalorder %s1701_s0, %s2332_s19  ;;  %s2423_s29 = smov [#allocation15]  }
  0x90   : > { %1933 = vmatpush3.bf16.msra.mxu1 %v2631_v5  ;;  %1938 = vmatprep.subr.bf16.mxu0 %v2418_v2 }
  0x91   : > { %1946 = vmatprep.subr.bf16.mxu1 %v2418_v2  ;;  %p2334_p5 = pnand %p2333_p1, %p3010_p3 }
  0x92   : > { %1927 = vmatmul.mubr.msk.bf16.vlgmr.msra.gmra.mxu0 %vm418_vm2, %v394_v6 }
  0x93   : > { %1935 = vmatmul.mubr.msk.bf16.vlgmr.msra.gmra.mxu1 %vm418_vm2, %v468_v8  ;;  %1939 = vmatpush3.bf16.msra.mxu0 %v2625_v3  ;;  %s2932_s27 = scalar_lea.hbm %s3009_s17, %s1867_s23  ;;  %p2335_p8 = pneg %p2334_p5 }
  0x94   : > { %1940 = vmatprep.subr.bf16.mxu0 %v2418_v2  ;;  %1942 = vmatprep.mubr.msk.bf16.mxu0 %vm2419_vm1, %v2418_v2 }
  0x95   : > { %1947 = vmatpush3.bf16.msra.mxu1 %v2625_v3  ;;  %1950 = vmatprep.mubr.msk.bf16.mxu1 %vm2419_vm1, %v2418_v2 }
  0x96   : > { %1948 = vmatprep.subr.bf16.mxu1 %v2418_v2 }
  0x97   : > { %1941 = vmatpush3.bf16.msra.mxu0 %v2631_v5 }
  0x98   : > { %1954 = vmatprep.subr.bf16.mxu0 %v2418_v2 }
  0x99   : > { %1949 = vmatpush3.bf16.msra.mxu1 %v2631_v5 }
  0x9a   : > { %1962 = vmatprep.subr.bf16.mxu1 %v2418_v2 }
 0x152   : > { %v456_v10 = vpop.f32.mrf.mxu0 }
 0x153   : > { %v524_v11 = vpop.f32.mrf.mxu1  ;;  %v2664_v20 = vadd.f32 %v1820_v19, %v456_v10 }
 0x154   : > { %v525_v12 = vadd.f32 %v2657_v9, %v524_v11  ;;  %v1928_v13 = vpop.f32.mrf.mxu0 }
 0x155   : > { %v1936_v14 = vpop.f32.mrf.mxu1 }
 0x156   : > { %538 = vrot.lane.b32.xlu0 %v525_v12, %s2420_s30  ;;  %v459_v15 = vpop.f32.mrf.mxu0  ;;  %v530_v21 = vadd.f32 %v525_v12, %v2664_v20 }
 0x157   : > { %v527_v16 = vpop.f32.mrf.mxu1 }
 0x158   : > { %v1929_v17 = vpop.f32.mrf.mxu0  ;;  %v1828_v22 = vmul.f32 -1.442695, %v530_v21 }
 0x159   : > { %v1937_v18 = vpop.f32.mrf.mxu1 }
 0x15a   : > { %2112 = vpow2.f32 %v1828_v22 }
 0x167   : > { %v2113_v23 = vpop.eup %2112 }
 0x168   : > { %v534_v24 = vadd.f32 1.0, %v2113_v23 }
 0x16a   : > { %2114 = vrcp.f32 %v534_v24 }
 0x177   : > { %v2115_v25 = vpop.eup %2114 }
 0x1c8   : > { %v539_v26 = vpop.permute.xlu0 %538 }
 0x1c9   : > { %v541_v27 = vmul.f32 %v2115_v25, %v539_v26 }
 0x1cb   : > { %543 = vrot.lane.b32.xlu0 %v541_v27, %s2420_s30 }
 0x23d   : > { %v544_v28 = vpop.permute.xlu0 %543 }
 0x23e   : > { %v546_v29 = vadd.f32 %v544_v28, %v2664_v20 }
 0x240   : > { %2116 = vtanh.f32 %v546_v29 }
 0x24d   : > { %v2117_v30 = vpop.eup %2116 }
 0x24e   : > { %549 = vrot.lane.b32.xlu1 %v2117_v30, %s2420_s30 }
 0x2c0   : > { %v550_v31 = vpop.permute.xlu1 %549 }
 0x2c1   : > { %v552_v32 = vsub.f32 %v467_v7, %v550_v31 }
 0x2c3   : > { %554 = vrot.lane.b32.xlu1 %v552_v32, %s2421_s13 }
 0x335   : > { %v555_v33 = vpop.permute.xlu1 %554 }
 0x336   : > { %v557_v34 = vmul.f32 %v2115_v25, %v555_v33 }
 0x338   : > { %559 = vrot.lane.b32.xlu0 %v557_v34, %s2421_s13 }
 0x3aa   : > { %v560_v35 = vpop.permute.xlu0 %559 }
 0x3ab   : > { %v2672_v36 = vadd.f32 %v2117_v30, %v560_v35 }
 0x3ad   : > { %v563_v37 = vpack.c.bf16 %v2672_v36, %v2672_v36 }
 0x3af   : > { %565 = vrot.lane.b32.xlu1 %v563_v37, %s2420_s30 }
 0x421   : > { %v566_v38 = vpop.permute.xlu1 %565 }
 0x422   : > { %1943 = vmatmul.mubr.msk.bf16.vlgmr.msra.gmra.mxu0 %vm418_vm2, %v566_v38 }
 0x423   : > { %1955 = vmatpush3.bf16.msra.mxu0 %v2625_v3  ;;  %1958 = vmatprep.mubr.msk.bf16.mxu0 %vm2419_vm1, %v2418_v2 }
 0x424   : > { %1956 = vmatprep.subr.bf16.mxu0 %v2418_v2 }
 0x427   : > { %1957 = vmatpush3.bf16.msra.mxu0 %v2631_v5 }
 0x428   : > { %1970 = vmatprep.subr.bf16.mxu0 %v2418_v2 }
 0x4e2   : > { %v604_v39 = vpop.f32.mrf.mxu0 }
 0x4e3   : > { %v605_v40 = vadd.f32 %v2657_v9, %v604_v39 }
 0x4e4   : > { %v1944_v41 = vpop.f32.mrf.mxu0 }
 0x4e5   : > { %v611_v42 = vrot.slane %v605_v40, 6 }
 0x4e6   : > { %v607_v43 = vpop.f32.mrf.mxu0 }
 0x4e7   : > { %620 = vrot.lane.b32.xlu0 %v611_v42, %s2420_s30  ;;  %v613_v45 = vadd.f32 %v611_v42, %v2664_v20 }
 0x4e8   : > { %v1945_v44 = vpop.f32.mrf.mxu0 }
 0x4e9   : > { %v1830_v46 = vmul.f32 -1.442695, %v613_v45 }
 0x4eb   : > { %2118 = vpow2.f32 %v1830_v46 }
 0x4f8   : > { %v2119_v47 = vpop.eup %2118 }
 0x4f9   : > { %v617_v48 = vadd.f32 1.0, %v2119_v47 }
 0x4fb   : > { %2120 = vrcp.f32 %v617_v48 }
 0x508   : > { %v2121_v49 = vpop.eup %2120 }
 0x559   : > { %v621_v50 = vpop.permute.xlu0 %620 }
 0x55a   : > { %v623_v51 = vmul.f32 %v2121_v49, %v621_v50  ;;  %v2106_v50 = vld [vmem:[#allocation7 + $0x8] sm:$0xff]  }
 0x55c   : > { %625 = vrot.lane.b32.xlu1 %v623_v51, %s2420_s30  ;;  %v2721_v51 = vld [vmem:[#allocation8] sm:$0xff]  }
 0x5ce   : > { %v626_v52 = vpop.permute.xlu1 %625 }
 0x5cf   : > { %v628_v53 = vadd.f32 %v626_v52, %v2664_v20  ;;  %v2723_v52 = vld [vmem:[#allocation3] sm:$0x3] }
 0x5d1   : > { %2122 = vtanh.f32 %v628_v53 }
 0x5de   : > { %v2123_v54 = vpop.eup %2122 }
 0x5df   : > { %v631_v55 = vrot.slane %v2123_v54, 2 }
 0x5e1   : > { %v633_v56 = vsub.f32 %v2672_v36, %v631_v55 }
 0x5e3   : > { %v635_v57 = vrot.slane %v633_v56, 6 }
 0x5e5   : > { %636 = vrot.lane.b32.xlu0 %v635_v57, %s2422_s24 }
 0x657   : > { %v637_v58 = vpop.permute.xlu0 %636 }
 0x658   : > { %v639_v59 = vmul.f32 %v2121_v49, %v637_v58  ;;  %v2718_v49 = vld [vmem:[#allocation8 + $0x8] sm:$0xff]  }
 0x65a   : > { %641 = vrot.lane.b32.xlu1 %v639_v59, %s2421_s13 }
 0x6cc   : > { %v642_v60 = vpop.permute.xlu1 %641 }
 0x6cd   : > { %v2692_v61 = vadd.f32 %v2123_v54, %v642_v60  ;;  %v899_v54 = vpack.c.bf16 %v2723_v52, %v2723_v52 }
 0x6cf   : > { %v645_v62 = vpack.c.bf16 %v2692_v61, %v2692_v61  ;;  %v818_v57 = vsel %vm817_vm3, %v2672_v36, %v2692_v61 }
 0x6d1   : > { %v647_v63 = vrot.slane %v645_v62, 1 }
 0x6d3   : > { %648 = vrot.lane.b32.xlu0 %v647_v63, %s2420_s30  ;;  %v2752_v63 = vld [vmem:[%s2981_s10] ss:$0 sm:$0xff] }
 0x745   : > { %v649_v0 = vpop.permute.xlu0 %648 }
 0x746   : > { %1951 = vmatmul.mubr.msk.bf16.vlgmr.msra.gmra.mxu1 %vm418_vm2, %v649_v0 }
 0x747   : > { %1966 = vmatprep.mubr.msk.bf16.mxu1 %vm2419_vm1, %v2418_v2  ;;  %1963 = vmatpush3.bf16.msra.mxu1 %v2106_v50 }
 0x748   : > { %1964 = vmatprep.subr.bf16.mxu1 %v2418_v2 }
 0x806   : > { %v687_v1 = vpop.f32.mrf.mxu1 }
 0x807   : > { %v688_v3 = vadd.f32 %v2657_v9, %v687_v1 }
 0x808   : > { %v1952_v4 = vpop.f32.mrf.mxu1 }
 0x809   : > { %v694_v5 = vrot.slane %v688_v3, 4 }
 0x80a   : > { %v690_v6 = vpop.f32.mrf.mxu1 }
 0x80b   : > { %703 = vrot.lane.b32.xlu1 %v694_v5, %s2420_s30  ;;  %v696_v8 = vadd.f32 %v694_v5, %v2664_v20  ;;  %v1835_v5 = vld [vmem:[%s2980_s9] ss:$0 sm:$0xff] }
 0x80c   : > { %v1953_v7 = vpop.f32.mrf.mxu1 }
 0x80d   : > { %v1832_v10 = vmul.f32 -1.442695, %v696_v8 }
 0x80f   : > { %2124 = vpow2.f32 %v1832_v10 }
 0x81c   : > { %v2125_v11 = vpop.eup %2124 }
 0x81d   : > { %v700_v12 = vadd.f32 1.0, %v2125_v11 }
 0x81f   : > { %2126 = vrcp.f32 %v700_v12 }
 0x82c   : > { %v2127_v13 = vpop.eup %2126 }
 0x87d   : > { %v704_v14 = vpop.permute.xlu1 %703 }
 0x87e   : > { %v706_v15 = vmul.f32 %v2127_v13, %v704_v14 }
 0x880   : > { %708 = vrot.lane.b32.xlu0 %v706_v15, %s2420_s30 }
 0x8f2   : > { %v709_v16 = vpop.permute.xlu0 %708 }
 0x8f3   : > { %v711_v17 = vadd.f32 %v709_v16, %v2664_v20 }
 0x8f5   : > { %2128 = vtanh.f32 %v711_v17 }
 0x902   : > { %v2129_v18 = vpop.eup %2128 }
 0x903   : > { %v714_v19 = vrot.slane %v2129_v18, 2 }
 0x905   : > { %v716_v21 = vsub.f32 %v2692_v61, %v714_v19 }
 0x907   : > { %v718_v22 = vrot.slane %v716_v21, 6 }
 0x909   : > { %719 = vrot.lane.b32.xlu1 %v718_v22, %s2422_s24 }
 0x97b   : > { %v720_v23 = vpop.permute.xlu1 %719 }
 0x97c   : > { %v722_v24 = vmul.f32 %v2127_v13, %v720_v23 }
 0x97e   : > { %724 = vrot.lane.b32.xlu0 %v722_v24, %s2421_s13 }
 0x9f0   : > { %v725_v25 = vpop.permute.xlu0 %724 }
 0x9f1   : > { %v727_v26 = vadd.f32 %v2129_v18, %v725_v25 }
 0x9f3   : > { %v728_v27 = vpack.c.bf16 %v727_v26, %v727_v26  ;;  %v820_v59 = vsel %vm819_vm4, %v818_v57, %v727_v26 }
 0x9f5   : > { %v730_v28 = vrot.slane %v728_v27, 2 }
 0x9f7   : > { %731 = vrot.lane.b32.xlu1 %v730_v28, %s2420_s30 }
 0xa69   : > { %v732_v29 = vpop.permute.xlu1 %731 }
 0xa6a   : > { %1959 = vmatmul.mubr.msk.bf16.vlgmr.msra.gmra.mxu0 %vm418_vm2, %v732_v29 }
 0xa6b   : > { %1974 = vmatprep.mubr.msk.bf16.mxu0 %vm2419_vm1, %v2418_v2  ;;  %1971 = vmatpush3.bf16.msra.mxu0 %v2718_v49 }
 0xa6c   : > { %1972 = vmatprep.subr.bf16.mxu0 %v2418_v2 }
 0xa6f   : > { %1973 = vmatpush3.bf16.msra.mxu0 %v2721_v51 }
 0xa70   : > { %1986 = vmatprep.subr.bf16.mxu0 %v2418_v2 }
 0xa72   : > { %1975 = vmatmul.mubr.msk.bf16.vlgmr.msra.gmra.mxu0 %vm418_vm2, %v899_v54 }
 0xa73   : > { %1987 = vmatpush3.bf16.msra.mxu0 %v2718_v49  ;;  %1990 = vmatprep.mubr.msk.bf16.mxu0 %vm2419_vm1, %v2418_v2 }
 0xa74   : > { %1988 = vmatprep.subr.bf16.mxu0 %v2418_v2 }
 0xa77   : > { %1989 = vmatpush3.bf16.msra.mxu0 %v2721_v51 }
 0xa78   : > { %2002 = vmatprep.subr.bf16.mxu0 %v2418_v2 }
 0xb2a   : > { %v770_v30 = vpop.f32.mrf.mxu0 }
 0xb2b   : > { %v771_v31 = vadd.f32 %v2657_v9, %v770_v30 }
 0xb2c   : > { %v1960_v32 = vpop.f32.mrf.mxu0 }
 0xb2d   : > { %v777_v33 = vrot.slane %v771_v31, 2 }
 0xb2e   : > { %v773_v34 = vpop.f32.mrf.mxu0 }
 0xb2f   : > { %786 = vrot.lane.b32.xlu0 %v777_v33, %s2420_s30  ;;  %v779_v37 = vadd.f32 %v777_v33, %v2664_v20 }
 0xb30   : > { %v1961_v35 = vpop.f32.mrf.mxu0 }
 0xb31   : > { %v1834_v38 = vmul.f32 -1.442695, %v779_v37 }
 0xb32   : > { %v955_v0 = vpop.f32.mrf.mxu0 }
 0xb33   : > { %2130 = vpow2.f32 %v1834_v38  ;;  %v956_v1 = vadd.f32 %v2752_v63, %v955_v0 }
 0xb34   : > { %v1976_v3 = vpop.f32.mrf.mxu0 }
 0xb36   : > { %v958_v36 = vpop.f32.mrf.mxu0 }
 0xb38   : > { %v1977_v61 = vpop.f32.mrf.mxu0 }
 0xb40   : > { %v2131_v39 = vpop.eup %2130 }
 0xb41   : > { %v783_v40 = vadd.f32 1.0, %v2131_v39 }
 0xb43   : > { %2132 = vrcp.f32 %v783_v40 }
 0xb50   : > { %v2133_v41 = vpop.eup %2132 }
 0xba1   : > { %v787_v42 = vpop.permute.xlu0 %786 }
 0xba2   : > { %v789_v43 = vmul.f32 %v2133_v41, %v787_v42 }
 0xba4   : > { %791 = vrot.lane.b32.xlu1 %v789_v43, %s2420_s30 }
 0xc16   : > { %v792_v44 = vpop.permute.xlu1 %791 }
 0xc17   : > { %v794_v9 = vadd.f32 %v792_v44, %v2664_v20  ;;  %v2107_v20 = vld [vmem:[#allocation7] sm:$0xff]  }
 0xc18   : > { %1965 = vmatpush3.bf16.msra.mxu1 %v2107_v20 }
 0xc19   : > { %2134 = vtanh.f32 %v794_v9  ;;  %1978 = vmatprep.subr.bf16.mxu1 %v2418_v2 }
 0xc26   : > { %v2135_v45 = vpop.eup %2134 }
 0xc27   : > { %v797_v46 = vrot.slane %v2135_v45, 2 }
 0xc29   : > { %v799_v47 = vsub.f32 %v727_v26, %v797_v46 }
 0xc2b   : > { %v801_v48 = vrot.slane %v799_v47, 6 }
 0xc2d   : > { %802 = vrot.lane.b32.xlu0 %v801_v48, %s2422_s24 }
 0xc9f   : > { %v803_v53 = vpop.permute.xlu0 %802 }
 0xca0   : > { %v805_v55 = vmul.f32 %v2133_v41, %v803_v53 }
 0xca2   : > { %807 = vrot.lane.b32.xlu1 %v805_v55, %s2421_s13 }
 0xca6   : > { %969 = vrot.lane.b32.xlu1 %v956_v1, %s2420_s30 }
 0xd14   : > { %v808_v56 = vpop.permute.xlu1 %807 }
 0xd15   : > { %v2743_v58 = vadd.f32 %v2135_v45, %v808_v56 }
 0xd17   : > { %v822_v60 = vsel %vm821_vm5, %v820_v59, %v2743_v58 }
 0xd18   : > { %v823_v62 = vpack.c.bf16 %v822_v60, %v822_v60  ;;  %v970_v16 = vpop.permute.xlu1 %969 }
 0xd1a   : > { %836 = vrot.lane.b32.xlu0 %v823_v62, %s2420_s30 }
 0xd8c   : > { %v837_v4 = vpop.permute.xlu0 %836 }
 0xd8d   : > { %1967 = vmatmul.mubr.msk.bf16.vlgmr.msra.gmra.mxu1 %vm418_vm2, %v837_v4 }
 0xd8e   : > { %1979 = vmatpush3.bf16.msra.mxu1 %v2718_v49  ;;  %1982 = vmatprep.mubr.msk.bf16.mxu1 %vm2419_vm1, %v2418_v2 }
 0xd8f   : > { %1980 = vmatprep.subr.bf16.mxu1 %v2418_v2 }
 0xd92   : > { %1981 = vmatpush3.bf16.msra.mxu1 %v2721_v51 }
 0xd93   : > { %1994 = vmatprep.subr.bf16.mxu1 %v2418_v2 }
 0xe4d   : > { %v887_v6 = vpop.f32.mrf.mxu1 }
 0xe4e   : > { %v2766_v7 = vadd.f32 %v1835_v5, %v887_v6 }
 0xe4f   : > { %v1968_v8 = vpop.f32.mrf.mxu1 }
 0xe50   : > { %v961_v10 = vadd.f32 %v956_v1, %v2766_v7 }
 0xe51   : > { %v890_v11 = vpop.f32.mrf.mxu1 }
 0xe52   : > { %v1843_v12 = vmul.f32 -1.442695, %v961_v10 }
 0xe53   : > { %v1969_v13 = vpop.f32.mrf.mxu1 }
 0xe54   : > { %2136 = vpow2.f32 %v1843_v12 }
 0xe61   : > { %v2137_v14 = vpop.eup %2136 }
 0xe62   : > { %v965_v15 = vadd.f32 1.0, %v2137_v14 }
 0xe64   : > { %2138 = vrcp.f32 %v965_v15 }
 0xe71   : > { %v2139_v17 = vpop.eup %2138 }
 0xe72   : > { %v972_v18 = vmul.f32 %v2139_v17, %v970_v16 }
 0xe74   : > { %974 = vrot.lane.b32.xlu0 %v972_v18, %s2420_s30 }
 0xee6   : > { %v975_v19 = vpop.permute.xlu0 %974 }
 0xee7   : > { %v977_v21 = vadd.f32 %v975_v19, %v2766_v7 }
 0xee9   : > { %2140 = vtanh.f32 %v977_v21 }
 0xef6   : > { %v2141_v22 = vpop.eup %2140 }
 0xef7   : > { %980 = vrot.lane.b32.xlu1 %v2141_v22, %s2420_s30 }
 0xf69   : > { %v981_v23 = vpop.permute.xlu1 %980 }
 0xf6a   : > { %v983_v24 = vsub.f32 %v2723_v52, %v981_v23 }
 0xf6c   : > { %985 = vrot.lane.b32.xlu0 %v983_v24, %s2421_s13 }
 0xfde   : > { %v986_v25 = vpop.permute.xlu0 %985 }
 0xfdf   : > { %v988_v26 = vmul.f32 %v2139_v17, %v986_v25 }
 0xfe1   : > { %990 = vrot.lane.b32.xlu1 %v988_v26, %s2421_s13 }
0x1053   : > { %v991_v27 = vpop.permute.xlu1 %990 }
0x1054   : > { %v2775_v28 = vadd.f32 %v2141_v22, %v991_v27 }
0x1056   : > { %v994_v29 = vpack.c.bf16 %v2775_v28, %v2775_v28 }
0x1058   : > { %996 = vrot.lane.b32.xlu0 %v994_v29, %s2420_s30 }
0x10ca   : > { %v997_v30 = vpop.permute.xlu0 %996 }
0x10cb   : > { %1983 = vmatmul.mubr.msk.bf16.vlgmr.msra.gmra.mxu1 %vm418_vm2, %v997_v30 }
0x10cc   : > { %1995 = vmatpush3.bf16.msra.mxu1 %v2718_v49  ;;  %1998 = vmatprep.mubr.msk.bf16.mxu1 %vm2419_vm1, %v2418_v2 }
0x10cd   : > { %1996 = vmatprep.subr.bf16.mxu1 %v2418_v2 }
0x10d0   : > { %1997 = vmatpush3.bf16.msra.mxu1 %v2721_v51 }
0x10d1   : > { %2010 = vmatprep.subr.bf16.mxu1 %v2418_v2 }
0x118b   : > { %v1035_v31 = vpop.f32.mrf.mxu1 }
0x118c   : > { %v1036_v32 = vadd.f32 %v2752_v63, %v1035_v31 }
0x118d   : > { %v1984_v33 = vpop.f32.mrf.mxu1 }
0x118e   : > { %v1042_v34 = vrot.slane %v1036_v32, 6 }
0x118f   : > { %v1038_v35 = vpop.f32.mrf.mxu1 }
0x1190   : > { %1051 = vrot.lane.b32.xlu1 %v1042_v34, %s2420_s30  ;;  %v1044_v38 = vadd.f32 %v1042_v34, %v2766_v7 }
0x1191   : > { %v1985_v37 = vpop.f32.mrf.mxu1 }
0x1192   : > { %v1845_v39 = vmul.f32 -1.442695, %v1044_v38 }
0x1194   : > { %2142 = vpow2.f32 %v1845_v39 }
0x11a1   : > { %v2143_v40 = vpop.eup %2142 }
0x11a2   : > { %v1048_v41 = vadd.f32 1.0, %v2143_v40 }
0x11a4   : > { %2144 = vrcp.f32 %v1048_v41 }
0x11b1   : > { %v2145_v42 = vpop.eup %2144 }
0x1202   : > { %v1052_v43 = vpop.permute.xlu1 %1051 }
0x1203   : > { %v1054_v44 = vmul.f32 %v2145_v42, %v1052_v43  ;;  %v2821_v43 = vld [vmem:[#allocation10 + $0x8] sm:$0xff]  }
0x1205   : > { %1056 = vrot.lane.b32.xlu0 %v1054_v44, %s2420_s30  ;;  %v2110_v44 = vld [vmem:[#allocation9 + $0x8] sm:$0xff]  }
0x1277   : > { %v1057_v9 = vpop.permute.xlu0 %1056 }
0x1278   : > { %v1059_v45 = vadd.f32 %v1057_v9, %v2766_v7  ;;  %v2824_v9 = vld [vmem:[#allocation10] sm:$0xff]  }
0x127a   : > { %2146 = vtanh.f32 %v1059_v45  ;;  %v1325_v45 = vld [vmem:[#allocation4] sm:$0x3] }
0x1287   : > { %v2147_v46 = vpop.eup %2146 }
0x1288   : > { %v1062_v47 = vrot.slane %v2147_v46, 2 }
0x128a   : > { %v1064_v48 = vsub.f32 %v2775_v28, %v1062_v47  ;;  %v1326_v47 = vpack.c.bf16 %v1325_v45, %v1325_v45 }
0x128c   : > { %v1066_v49 = vrot.slane %v1064_v48, 6 }
0x128e   : > { %1067 = vrot.lane.b32.xlu1 %v1066_v49, %s2422_s24 }
0x1300   : > { %v1068_v50 = vpop.permute.xlu1 %1067 }
0x1301   : > { %v1070_v51 = vmul.f32 %v2145_v42, %v1068_v50 }
0x1303   : > { %1072 = vrot.lane.b32.xlu0 %v1070_v51, %s2421_s13 }
0x1375   : > { %v1073_v52 = vpop.permute.xlu0 %1072 }
0x1376   : > { %v2795_v20 = vadd.f32 %v2147_v46, %v1073_v52  ;;  %v2111_v46 = vld [vmem:[#allocation9] sm:$0xff]  }
0x1378   : > { %v1076_v53 = vpack.c.bf16 %v2795_v20, %v2795_v20  ;;  %v1247_v50 = vsel %vm817_vm3, %v2775_v28, %v2795_v20 }
0x137a   : > { %v1078_v54 = vrot.slane %v1076_v53, 1 }
0x137c   : > { %1079 = vrot.lane.b32.xlu1 %v1078_v54, %s2420_s30 }
0x13ee   : > { %v1080_v55 = vpop.permute.xlu1 %1079 }
0x13ef   : > { %1991 = vmatmul.mubr.msk.bf16.vlgmr.msra.gmra.mxu0 %vm418_vm2, %v1080_v55  ;;  %v2850_v55 = vld [vmem:[%s2983_s12] ss:$0 sm:$0xff] }
0x13f0   : > { %2006 = vmatprep.mubr.msk.bf16.mxu0 %vm2419_vm1, %v2418_v2  ;;  %2003 = vmatpush3.bf16.msra.mxu0 %v2110_v44 }
0x13f1   : > { %2004 = vmatprep.subr.bf16.mxu0 %v2418_v2 }
0x13f4   : > { %2005 = vmatpush3.bf16.msra.mxu0 %v2111_v46 }
0x13f5   : > { %2018 = vmatprep.subr.bf16.mxu0 %v2418_v2 }
0x14af   : > { %v1118_v56 = vpop.f32.mrf.mxu0 }
0x14b0   : > { %v1119_v57 = vadd.f32 %v2752_v63, %v1118_v56 }
0x14b1   : > { %v1992_v59 = vpop.f32.mrf.mxu0 }
0x14b2   : > { %v1125_v60 = vrot.slane %v1119_v57, 4 }
0x14b3   : > { %v1121_v62 = vpop.f32.mrf.mxu0 }
0x14b4   : > { %1134 = vrot.lane.b32.xlu0 %v1125_v60, %s2420_s30  ;;  %v1127_v1 = vadd.f32 %v1125_v60, %v2766_v7  ;;  %v1850_v62 = vld [vmem:[%s2982_s11] ss:$0 sm:$0xff] }
0x14b5   : > { %v1993_v0 = vpop.f32.mrf.mxu0 }
0x14b6   : > { %v1847_v3 = vmul.f32 -1.442695, %v1127_v1 }
0x14b8   : > { %2148 = vpow2.f32 %v1847_v3 }
0x14c5   : > { %v2149_v36 = vpop.eup %2148 }
0x14c6   : > { %v1131_v61 = vadd.f32 1.0, %v2149_v36 }
0x14c8   : > { %2150 = vrcp.f32 %v1131_v61 }
0x14d5   : > { %v2151_v4 = vpop.eup %2150 }
0x1526   : > { %v1135_v5 = vpop.permute.xlu0 %1134 }
0x1527   : > { %v1137_v6 = vmul.f32 %v2151_v4, %v1135_v5 }
0x1529   : > { %1139 = vrot.lane.b32.xlu1 %v1137_v6, %s2420_s30 }
0x159b   : > { %v1140_v8 = vpop.permute.xlu1 %1139 }
0x159c   : > { %v1142_v10 = vadd.f32 %v1140_v8, %v2766_v7 }
0x159e   : > { %2152 = vtanh.f32 %v1142_v10 }
0x15ab   : > { %v2153_v11 = vpop.eup %2152 }
0x15ac   : > { %v1145_v12 = vrot.slane %v2153_v11, 2 }
0x15ae   : > { %v1147_v13 = vsub.f32 %v2795_v20, %v1145_v12 }
0x15b0   : > { %v1149_v14 = vrot.slane %v1147_v13, 6 }
0x15b2   : > { %1150 = vrot.lane.b32.xlu0 %v1149_v14, %s2422_s24 }
0x1624   : > { %v1151_v15 = vpop.permute.xlu0 %1150 }
0x1625   : > { %v1153_v16 = vmul.f32 %v2151_v4, %v1151_v15 }
0x1627   : > { %1155 = vrot.lane.b32.xlu1 %v1153_v16, %s2421_s13 }
0x1699   : > { %v1156_v17 = vpop.permute.xlu1 %1155 }
0x169a   : > { %v1158_v18 = vadd.f32 %v2153_v11, %v1156_v17 }
0x169c   : > { %v1159_v19 = vpack.c.bf16 %v1158_v18, %v1158_v18  ;;  %v1248_v52 = vsel %vm819_vm4, %v1247_v50, %v1158_v18 }
0x169e   : > { %v1161_v21 = vrot.slane %v1159_v19, 2 }
0x16a0   : > { %1162 = vrot.lane.b32.xlu0 %v1161_v21, %s2420_s30 }
0x1712   : > { %v1163_v22 = vpop.permute.xlu0 %1162 }
0x1713   : > { %1999 = vmatmul.mubr.msk.bf16.vlgmr.msra.gmra.mxu1 %vm418_vm2, %v1163_v22 }
0x1714   : > { %2014 = vmatprep.mubr.msk.bf16.mxu1 %vm2419_vm1, %v2418_v2  ;;  %2011 = vmatpush3.bf16.msra.mxu1 %v2821_v43 }
0x1715   : > { %2012 = vmatprep.subr.bf16.mxu1 %v2418_v2 }
0x1718   : > { %2013 = vmatpush3.bf16.msra.mxu1 %v2824_v9 }
0x1719   : > { %2026 = vmatprep.subr.bf16.mxu1 %v2418_v2 }
0x171b   : > { %2015 = vmatmul.mubr.msk.bf16.vlgmr.msra.gmra.mxu1 %vm418_vm2, %v1326_v47 }
0x171c   : > { %2027 = vmatpush3.bf16.msra.mxu1 %v2821_v43  ;;  %2030 = vmatprep.mubr.msk.bf16.mxu1 %vm2419_vm1, %v2418_v2 }
0x171d   : > { %2028 = vmatprep.subr.bf16.mxu1 %v2418_v2 }
0x1720   : > { %2029 = vmatpush3.bf16.msra.mxu1 %v2824_v9 }
0x17d3   : > { %v1201_v23 = vpop.f32.mrf.mxu1 }
0x17d4   : > { %v1202_v24 = vadd.f32 %v2752_v63, %v1201_v23 }
0x17d5   : > { %v2000_v25 = vpop.f32.mrf.mxu1 }
0x17d6   : > { %v1208_v26 = vrot.slane %v1202_v24, 2 }
0x17d7   : > { %v1204_v27 = vpop.f32.mrf.mxu1 }
0x17d8   : > { %1217 = vrot.lane.b32.xlu1 %v1208_v26, %s2420_s30  ;;  %v1210_v30 = vadd.f32 %v1208_v26, %v2766_v7 }
0x17d9   : > { %v2001_v29 = vpop.f32.mrf.mxu1 }
0x17da   : > { %v1849_v31 = vmul.f32 -1.442695, %v1210_v30 }
0x17db   : > { %v1382_v56 = vpop.f32.mrf.mxu1 }
0x17dc   : > { %2154 = vpow2.f32 %v1849_v31  ;;  %v1383_v57 = vadd.f32 %v2850_v55, %v1382_v56 }
0x17dd   : > { %v2016_v59 = vpop.f32.mrf.mxu1 }
0x17df   : > { %v1385_v28 = vpop.f32.mrf.mxu1 }
0x17e1   : > { %v2017_v20 = vpop.f32.mrf.mxu1 }
0x17e9   : > { %v2155_v32 = vpop.eup %2154 }
0x17ea   : > { %v1214_v33 = vadd.f32 1.0, %v2155_v32 }
0x17ec   : > { %2156 = vrcp.f32 %v1214_v33 }
0x17f9   : > { %v2157_v34 = vpop.eup %2156 }
0x184a   : > { %v1218_v35 = vpop.permute.xlu1 %1217 }
0x184b   : > { %v1220_v37 = vmul.f32 %v2157_v34, %v1218_v35 }
0x184d   : > { %1222 = vrot.lane.b32.xlu0 %v1220_v37, %s2420_s30 }
0x18bf   : > { %v1223_v38 = vpop.permute.xlu0 %1222 }
0x18c0   : > { %v1225_v63 = vadd.f32 %v1223_v38, %v2766_v7 }
0x18c2   : > { %2158 = vtanh.f32 %v1225_v63 }
0x18cf   : > { %v2159_v39 = vpop.eup %2158 }
0x18d0   : > { %v1228_v40 = vrot.slane %v2159_v39, 2 }
0x18d2   : > { %v1230_v41 = vsub.f32 %v1158_v18, %v1228_v40 }
0x18d4   : > { %v1232_v42 = vrot.slane %v1230_v41, 6 }
0x18d6   : > { %1233 = vrot.lane.b32.xlu1 %v1232_v42, %s2422_s24 }
0x1948   : > { %v1234_v7 = vpop.permute.xlu1 %1233 }
0x1949   : > { %v1236_v48 = vmul.f32 %v2157_v34, %v1234_v7 }
0x194b   : > { %1238 = vrot.lane.b32.xlu0 %v1236_v48, %s2421_s13 }
0x194f   : > { %1396 = vrot.lane.b32.xlu0 %v1383_v57, %s2420_s30 }
0x19bd   : > { %v1239_v49 = vpop.permute.xlu0 %1238 }
0x19be   : > { %v2841_v51 = vadd.f32 %v2159_v39, %v1239_v49 }
0x19c0   : > { %v1249_v53 = vsel %vm821_vm5, %v1248_v52, %v2841_v51 }
0x19c1   : > { %v1250_v54 = vpack.c.bf16 %v1249_v53, %v1249_v53  ;;  %v1397_v10 = vpop.permute.xlu0 %1396 }
0x19c3   : > { %1263 = vrot.lane.b32.xlu1 %v1250_v54, %s2420_s30 }
0x1a35   : > { %v1264_v60 = vpop.permute.xlu1 %1263 }
0x1a36   : > { %2007 = vmatmul.mubr.msk.bf16.vlgmr.msra.gmra.mxu0 %vm418_vm2, %v1264_v60 }
0x1a37   : > { %2019 = vmatpush3.bf16.msra.mxu0 %v2821_v43  ;;  %2022 = vmatprep.mubr.msk.bf16.mxu0 %vm2419_vm1, %v2418_v2 }
0x1a38   : > { %2020 = vmatprep.subr.bf16.mxu0 %v2418_v2 }
0x1a3b   : > { %2021 = vmatpush3.bf16.msra.mxu0 %v2824_v9 }
0x1a3c   : > { %2034 = vmatprep.subr.bf16.mxu0 %v2418_v2 }
0x1af6   : > { %v1314_v0 = vpop.f32.mrf.mxu0 }
0x1af7   : > { %v2864_v1 = vadd.f32 %v1850_v62, %v1314_v0 }
0x1af8   : > { %v2008_v3 = vpop.f32.mrf.mxu0 }
0x1af9   : > { %v1388_v36 = vadd.f32 %v1383_v57, %v2864_v1 }
0x1afa   : > { %v1317_v61 = vpop.f32.mrf.mxu0 }
0x1afb   : > { %v1858_v4 = vmul.f32 -1.442695, %v1388_v36 }
0x1afc   : > { %v2009_v5 = vpop.f32.mrf.mxu0 }
0x1afd   : > { %2160 = vpow2.f32 %v1858_v4 }
0x1b0a   : > { %v2161_v6 = vpop.eup %2160 }
0x1b0b   : > { %v1392_v8 = vadd.f32 1.0, %v2161_v6 }
0x1b0d   : > { %2162 = vrcp.f32 %v1392_v8 }
0x1b1a   : > { %v2163_v11 = vpop.eup %2162 }
0x1b1b   : > { %v1399_v12 = vmul.f32 %v2163_v11, %v1397_v10 }
0x1b1d   : > { %1401 = vrot.lane.b32.xlu1 %v1399_v12, %s2420_s30 }
0x1b8f   : > { %v1402_v13 = vpop.permute.xlu1 %1401 }
0x1b90   : > { %v1404_v14 = vadd.f32 %v1402_v13, %v2864_v1 }
0x1b92   : > { %2164 = vtanh.f32 %v1404_v14 }
0x1b9f   : > { %v2165_v15 = vpop.eup %2164 }
0x1ba0   : > { %1407 = vrot.lane.b32.xlu0 %v2165_v15, %s2420_s30 }
0x1c12   : > { %v1408_v16 = vpop.permute.xlu0 %1407 }
0x1c13   : > { %v1410_v17 = vsub.f32 %v1325_v45, %v1408_v16 }
0x1c15   : > { %1412 = vrot.lane.b32.xlu1 %v1410_v17, %s2421_s13 }
0x1c87   : > { %v1413_v18 = vpop.permute.xlu1 %1412 }
0x1c88   : > { %v1415_v19 = vmul.f32 %v2163_v11, %v1413_v18 }
0x1c8a   : > { %1417 = vrot.lane.b32.xlu0 %v1415_v19, %s2421_s13 }
0x1cfc   : > { %v1418_v21 = vpop.permute.xlu0 %1417 }
0x1cfd   : > { %v2872_v22 = vadd.f32 %v2165_v15, %v1418_v21 }
0x1cff   : > { %v1421_v23 = vpack.c.bf16 %v2872_v22, %v2872_v22 }
0x1d01   : > { %1423 = vrot.lane.b32.xlu1 %v1421_v23, %s2420_s30 }
0x1d73   : > { %v1424_v24 = vpop.permute.xlu1 %1423 }
0x1d74   : > { %2023 = vmatmul.mubr.msk.bf16.vlgmr.msra.gmra.mxu0 %vm418_vm2, %v1424_v24 }
0x1d75   : > { %2035 = vmatpush3.bf16.msra.mxu0 %v2821_v43  ;;  %2038 = vmatprep.mubr.msk.bf16.mxu0 %vm2419_vm1, %v2418_v2 }
0x1d76   : > { %2036 = vmatprep.subr.bf16.mxu0 %v2418_v2 }
0x1d79   : > { %2037 = vmatpush3.bf16.msra.mxu0 %v2824_v9 }
0x1e34   : > { %v1462_v25 = vpop.f32.mrf.mxu0 }
0x1e35   : > { %v1463_v26 = vadd.f32 %v2850_v55, %v1462_v25 }
0x1e36   : > { %v2024_v27 = vpop.f32.mrf.mxu0 }
0x1e37   : > { %v1469_v29 = vrot.slane %v1463_v26, 6 }
0x1e38   : > { %v1465_v30 = vpop.f32.mrf.mxu0 }
0x1e39   : > { %1478 = vrot.lane.b32.xlu0 %v1469_v29, %s2420_s30  ;;  %v1471_v32 = vadd.f32 %v1469_v29, %v2864_v1 }
0x1e3a   : > { %v2025_v31 = vpop.f32.mrf.mxu0 }
0x1e3b   : > { %v1860_v33 = vmul.f32 -1.442695, %v1471_v32 }
0x1e3d   : > { %2166 = vpow2.f32 %v1860_v33 }
0x1e4a   : > { %v2167_v34 = vpop.eup %2166 }
0x1e4b   : > { %v1475_v35 = vadd.f32 1.0, %v2167_v34 }
0x1e4d   : > { %2168 = vrcp.f32 %v1475_v35 }
0x1e5a   : > { %v2169_v37 = vpop.eup %2168 }
0x1eab   : > { %v1479_v2 = vpop.permute.xlu0 %1478 }
0x1eac   : > { %v1481_v38 = vmul.f32 %v2169_v37, %v1479_v2 }
0x1eae   : > { %1483 = vrot.lane.b32.xlu1 %v1481_v38, %s2420_s30 }
0x1f20   : > { %v1484_v63 = vpop.permute.xlu1 %1483 }
0x1f21   : > { %v1486_v39 = vadd.f32 %v1484_v63, %v2864_v1 }
0x1f23   : > { %2170 = vtanh.f32 %v1486_v39 }
0x1f30   : > { %v2171_v40 = vpop.eup %2170 }
0x1f31   : > { %v1489_v41 = vrot.slane %v2171_v40, 2 }
0x1f33   : > { %v1491_v42 = vsub.f32 %v2872_v22, %v1489_v41 }
0x1f35   : > { %v1493_v43 = vrot.slane %v1491_v42, 6 }
0x1f37   : > { %1494 = vrot.lane.b32.xlu0 %v1493_v43, %s2422_s24 }
0x1fa9   : > { %v1495_v44 = vpop.permute.xlu0 %1494 }
0x1faa   : > { %v1497_v9 = vmul.f32 %v2169_v37, %v1495_v44 }
0x1fac   : > { %1499 = vrot.lane.b32.xlu1 %v1497_v9, %s2421_s13 }
0x201e   : > { %v1500_v45 = vpop.permute.xlu1 %1499 }
0x201f   : > { %v2891_v46 = vadd.f32 %v2171_v40, %v1500_v45 }
0x2021   : > { %v1503_v7 = vpack.c.bf16 %v2891_v46, %v2891_v46 }
0x2023   : > { %v1505_v47 = vrot.slane %v1503_v7, 1 }
0x2025   : > { %1506 = vrot.lane.b32.xlu0 %v1505_v47, %s2420_s30 }
0x2097   : > { %v1507_v48 = vpop.permute.xlu0 %1506 }
0x2098   : > { %2031 = vmatmul.mubr.msk.bf16.vlgmr.msra.gmra.mxu1 %vm418_vm2, %v1507_v48 }
0x2158   : > { %v1545_v49 = vpop.f32.mrf.mxu1 }
0x2159   : > { %v1546_v50 = vadd.f32 %v2850_v55, %v1545_v49 }
0x215a   : > { %v2032_v52 = vpop.f32.mrf.mxu1 }
0x215b   : > { %v1552_v53 = vrot.slane %v1546_v50, 4 }
0x215c   : > { %v1548_v54 = vpop.f32.mrf.mxu1 }
0x215d   : > { %1561 = vrot.lane.b32.xlu1 %v1552_v53, %s2420_s30  ;;  %v1554_v57 = vadd.f32 %v1552_v53, %v2864_v1 }
0x215e   : > { %v2033_v56 = vpop.f32.mrf.mxu1 }
0x215f   : > { %v1862_v59 = vmul.f32 -1.442695, %v1554_v57 }
0x2161   : > { %2172 = vpow2.f32 %v1862_v59 }
0x216e   : > { %v2173_v28 = vpop.eup %2172 }
0x216f   : > { %v1558_v20 = vadd.f32 1.0, %v2173_v28 }
0x2171   : > { %2174 = vrcp.f32 %v1558_v20 }
0x217e   : > { %v2175_v60 = vpop.eup %2174 }
0x21cf   : > { %v1562_v62 = vpop.permute.xlu1 %1561 }
0x21d0   : > { %v1564_v0 = vmul.f32 %v2175_v60, %v1562_v62 }
0x21d2   : > { %1566 = vrot.lane.b32.xlu0 %v1564_v0, %s2420_s30 }
0x2244   : > { %v1567_v3 = vpop.permute.xlu0 %1566 }
0x2245   : > { %v1569_v36 = vadd.f32 %v1567_v3, %v2864_v1 }
0x2247   : > { %2176 = vtanh.f32 %v1569_v36 }
0x2254   : > { %v2177_v61 = vpop.eup %2176 }
0x2255   : > { %v1572_v4 = vrot.slane %v2177_v61, 2 }
0x2257   : > { %v1574_v5 = vsub.f32 %v2891_v46, %v1572_v4 }
0x2259   : > { %v1576_v6 = vrot.slane %v1574_v5, 6 }
0x225b   : > { %1577 = vrot.lane.b32.xlu1 %v1576_v6, %s2422_s24 }
0x22cd   : > { %v1578_v8 = vpop.permute.xlu1 %1577 }
0x22ce   : > { %v1580_v10 = vmul.f32 %v2175_v60, %v1578_v8 }
0x22d0   : > { %1582 = vrot.lane.b32.xlu0 %v1580_v10, %s2421_s13 }
0x2342   : > { %v1583_v11 = vpop.permute.xlu0 %1582 }
0x2343   : > { %v1585_v12 = vadd.f32 %v2177_v61, %v1583_v11 }
0x2345   : > { %v1586_v13 = vpack.c.bf16 %v1585_v12, %v1585_v12 }
0x2347   : > { %v1588_v14 = vrot.slane %v1586_v13, 2 }
0x2349   : > { %1589 = vrot.lane.b32.xlu1 %v1588_v14, %s2420_s30 }
0x23bb   : > { %v1590_v15 = vpop.permute.xlu1 %1589 }
0x23bc   : > { %2039 = vmatmul.mubr.msk.bf16.vlgmr.msra.gmra.mxu0 %vm418_vm2, %v1590_v15 }
0x247c   : > { %v1628_v16 = vpop.f32.mrf.mxu0 }
0x247d   : > { %v1629_v17 = vadd.f32 %v2850_v55, %v1628_v16 }
0x247e   : > { %v2040_v18 = vpop.f32.mrf.mxu0 }
0x247f   : > { %v1635_v19 = vrot.slane %v1629_v17, 2 }
0x2480   : > { %v1631_v21 = vpop.f32.mrf.mxu0 }
0x2481   : > { %1644 = vrot.lane.b32.xlu0 %v1635_v19, %s2420_s30  ;;  %v1637_v24 = vadd.f32 %v1635_v19, %v2864_v1 }
0x2482   : > { %v2041_v23 = vpop.f32.mrf.mxu0 }
0x2483   : > { %v1864_v25 = vmul.f32 -1.442695, %v1637_v24 }
0x2485   : > { %2178 = vpow2.f32 %v1864_v25 }
0x2492   : > { %v2179_v26 = vpop.eup %2178 }
0x2493   : > { %v1641_v27 = vadd.f32 1.0, %v2179_v26 }
0x2495   : > { %2180 = vrcp.f32 %v1641_v27 }
0x24a2   : > { %v2181_v29 = vpop.eup %2180 }
0x24f3   : > { %v1645_v30 = vpop.permute.xlu0 %1644 }
0x24f4   : > { %v1647_v31 = vmul.f32 %v2181_v29, %v1645_v30 }
0x24f6   : > { %1649 = vrot.lane.b32.xlu1 %v1647_v31, %s2420_s30 }
0x2568   : > { %v1650_v32 = vpop.permute.xlu1 %1649 }
0x2569   : > { %v1652_v55 = vadd.f32 %v1650_v32, %v2864_v1  ;;  %v1674_v1 = vsel %vm817_vm3, %v2872_v22, %v2891_v46 }
0x256a   : > { %v1675_v40 = vsel %vm819_vm4, %v1674_v1, %v1585_v12 }
0x256b   : > { %2182 = vtanh.f32 %v1652_v55 }
0x2578   : > { %v2183_v33 = vpop.eup %2182 }
0x2579   : > { %v1655_v34 = vrot.slane %v2183_v33, 2 }
0x257b   : > { %v1657_v35 = vsub.f32 %v1585_v12, %v1655_v34 }
0x257d   : > { %v1659_v37 = vrot.slane %v1657_v35, 6 }
0x257f   : > { %1660 = vrot.lane.b32.xlu0 %v1659_v37, %s2422_s24 }
0x25f1   : > { %v1661_v2 = vpop.permute.xlu0 %1660 }
0x25f2   : > { %v1663_v38 = vmul.f32 %v2181_v29, %v1661_v2 }
0x25f4   : > { %1665 = vrot.lane.b32.xlu1 %v1663_v38, %s2421_s13 }
0x25f8   : > { %812 = vrot.lane.b32.xlu1 %v2743_v58, %s2420_s30 }
0x2666   : > { %v1666_v63 = vpop.permute.xlu1 %1665 }
0x2667   : > { %v1668_v39 = vadd.f32 %v2183_v33, %v1666_v63 }
0x2669   : > { %1670 = vrot.lane.b32.xlu1 %v1668_v39, %s2420_s30  ;;  %v1676_v41 = vsel %vm821_vm5, %v1675_v40, %v1668_v39 }
0x266a   : > { %v813_v42 = vpop.permute.xlu1 %812  ;;  %v1876_v43 = vpack.c.bf16 %v1676_v41, %v1676_v41 }
0x266b   : > { %816 = vst.msk [vmem:[#allocation2 - $0x6] sm:$0xc0] %vm815_vm6, %v813_v42 }
0x266c   : > { %1681 = vrot.lane.b32.xlu0 %v1876_v43, %s2420_s30 }
0x2670   : > { %1243 = vrot.lane.b32.xlu0 %v2841_v51, %s2420_s30  ;;  %s2336_s30 = sshll.u32 %s2423_s29, 4  ;;  %s2337_s30 = int_to_ptr.vmem [resolvable:$false] %s2336_s30 }
0x2671   : > { %s2338_s16 = scalar_lea.vmem %s2337_s30, 128  ;;  %p2339_p10 = scmp.lt.s32.totalorder %s1701_s0, %s2337_s30 }
0x2672   : > { %p2340_p2 = scmp.lt.s32.totalorder %s2338_s16, %s2332_s19 }
0x2674   : > { %p2341_p4 = por %p2340_p2, %p2339_p10 }
0x2676   : > { %p2342_p9 = pnand %p2341_p4, %p2335_p8 }
0x26db   : > { %v1671_v58 = vpop.permute.xlu1 %1670 }
0x26dc   : > { %1673 = vst.msk [vmem:[#allocation4 - $0x6] sm:$0xc0] %vm815_vm6, %v1671_v58 }
0x26de   : > { %v1682_v22 = vpop.permute.xlu0 %1681 }
0x26df   : > { %1685 = vst.msk [vmem:[%s2602_s25] sm:$0xf] %vm1684_vm7, %v1682_v22 }
0x26e0   : > { %2345 = shalt.err (!%p2342_p9)
}
0x26e1   : > { %s2346_s25 = scalar_lea.hbm %s2932_s27, 64  ;;  %s2350_s18 = scalar_lea.hbm %s3009_s17, 128 }
0x26e2   : > { %p2347_p7 = scmp.ne.s32.totalorder %s2932_s27, %s2346_s25  ;;  %p2351_p11 = scmp.lt.s32.totalorder %s2932_s27, %s3009_s17 }
0x26e3   : > { %p2352_p12 = scmp.lt.s32.totalorder %s2350_s18, %s2346_s25 }
0x26e4   : > { %p2348_p0 = pnand %p2347_p7, %p3010_p3 }
0x26e5   : > { %p2353_p13 = por %p2352_p12, %p2351_p11 }
0x26e6   : > { %p2349_p6 = pneg %p2348_p0 }
0x26e8   : > { %p2354_p1 = pnand %p2353_p13, %p2349_p6 }
0x26ea   : > { %2357 = shalt.err (!%p2354_p1)
}
0x26eb   : > { %2044 = dma.vmem_to_hbm [thread:$0]  (%p3010_p3), %s1701_s0, 64, %s2932_s27, %s1687_s14   ;;  %v1244_v51 = vpop.permute.xlu0 %1243 }
0x26ec   : > { %1246 = vst.msk [vmem:[#allocation3 - $0x6] sm:$0xc0] %vm815_vm6, %v1244_v51 }
0x26ed PF: > { %s3011_s13 = sld [smem:[#allocation38_spill]]  ;;  %p3014_p8 = scmp.ge.s32.totalorder %s2408_s28, 2 }
0x26ee   : > { %s3012_s24 = sld [smem:[#allocation42_spill]] }
0x26f3   : > { %s1712_s19 = sand.u32 1, %s3011_s13  }
0x26f4   : > { %p3013_p5 = scmp.ne.s32.totalorder %s3012_s24, 0  ;;  %s1713_s29 = scalar_lea.sflag [#allocation14], %s1712_s19 }
0x26f6   : > { %p2051_p10 = pnand %p3014_p8, %p3013_p5 }
0x26f8   : > { %p2052_p2 = pneg %p2051_p10 }
0x26fa   : > { %2391 = dma.done.wait (%p2052_p2), %s1713_s29, 64  }
0x26fb   : > { %2393 = vsyncadd (%p2052_p2), %s1713_s29, 4294967232  ;;  %s3015_s28 = sld [smem:[#allocation40_spill]]  ;;  %s3018_s25 = smov %s2400_s26 }
0x26fc   : > { %s3016_s20 = sld [smem:[#allocation39_spill]] }
0x26fd   : > { %s3017_s27 = sld [smem:[#allocation41_spill]] }
0x2701   : > { %p26_p3 = scmp.ge.s32.totalorder %s3015_s28, 4  }
0x2702   : > { %s3019_s26 = smov %s3016_s20 }
0x2703   :  { %28 = sbr.rel (!%p26_p3) target bundleno = 8 (0x8), region = 131 }
0x2708   :  { %1718 = vsyncpa [#allocation13], 1 }
0x2709   :  { %1720 = vsyncpa [#allocation13 + $0x1], 1 }
0x270a   :  { %1721 = vsyncpa [#allocation14], 1 }
0x270b   :  { %1723 = vsyncpa [#allocation14 + $0x1], 1 }
0x270c   :  { %1724 = vsyncmov [#allocation11] }
0x270f   :  { %s1725_s0 = vpop.sfrf %1724 }
0x2710   :  { %p1870_p4 = scmp.ne.s32.totalorder %s1725_s0, 0 }
0x2712   :  { %1729 = shalt.err (%p1870_p4)  }
0x2713   :  { %1731 = vsyncmov [#allocation11 + $0x1] }
0x2716   :  { %s1732_s14 = vpop.sfrf %1731 }
0x2717   :  { %p1871_p9 = scmp.ne.s32.totalorder %s1732_s14, 0 }
0x2719   :  { %1736 = shalt.err (%p1871_p9)  }
0x271a   :  { %1738 = vsyncmov [#allocation11 + $0x2] }
0x271d   :  { %s1739_s30 = vpop.sfrf %1738 }
0x271e   :  { %p1872_p7 = scmp.ne.s32.totalorder %s1739_s30, 0 }
0x2720   :  { %1743 = shalt.err (%p1872_p7)  }
0x2721   :  { %1745 = vsyncmov [#allocation11 + $0x3] }
0x2724   :  { %s1746_s16 = vpop.sfrf %1745 }
0x2725   :  { %p1873_p0 = scmp.ne.s32.totalorder %s1746_s16, 0 }
0x2727   :  { %1750 = shalt.err (%p1873_p0)  }
0x2728   :  { %1752 = vsyncmov [#allocation11 + $0x4] }
0x272b   :  { %s1753_s1 = vpop.sfrf %1752 }
0x272c   :  { %p1874_p6 = scmp.ne.s32.totalorder %s1753_s1, 0 }
0x272e   :  { %1757 = shalt.err (%p1874_p6)  }
0x272f   :  { %1759 = vsyncmov [#allocation11 + $0x5] }
0x2732   :  { %s1760_s2 = vpop.sfrf %1759 }
0x2733   :  { %p1875_p11 = scmp.ne.s32.totalorder %s1760_s2, 0 }
0x2735   :  { %1764 = shalt.err (%p1875_p11)  }

</bundles_post_ra>
